<compile_context>
chip_gen: v7x
topology: tpu7x:2x2x1
jax: 0.10.0
libtpu: 0.0.40
codegen_flags: <defaults>
</compile_context>

<pallas_src>
import numpy as np
import jax
import jax.numpy as jnp
from jax.experimental import pallas as pl
from jax.experimental.pallas import tpu as pltpu

BN_EPS = 1e-5
LRELU_SLOPE = 0.2


def _round_up(n, m):
    return ((n + m - 1) // m) * m


def _pick_batch_tile(batch):
    """Largest tile in {256,...,8} that divides the batch, else the whole batch.

    Never pads the batch (training-mode BN statistics would be corrupted by
    padded rows); real training should use a batch that is a multiple of 256
    (v6e/v7x MXU rows) or at least 16 (bf16 sublane pack)."""
    for t in (256, 128, 64, 32, 16, 8):
        if batch % t == 0:
            return t
    return batch


def _vmem_cap_bytes():
    """Physical per-TensorCore VMEM (64 MiB on v7x, 128 MiB on v5e/v6e)."""
    try:
        return int(pltpu.get_tpu_info().vmem_capacity_bytes)
    except Exception:
        return 64 * 1024 * 1024  # conservative: assume v7x


def _generator_kernel(xin_ref, cond_ref, wc1_ref, wc2_ref, wm_ref,
                      w1_ref, w2_ref, w3_ref, vecs_ref,
                      out_ref,
                      h1_ref, h2_ref, mod_ref,
                      s1_ref, s2_ref, t1_ref, t2_ref):
    f32 = jnp.float32
    bf16 = jnp.bfloat16
    k = pl.program_id(0)                       # pass index: 0, 1, 2
    i = pl.program_id(1)                       # batch-tile index
    out_pad = out_ref.shape[1]
    inv_b = 1.0 / (h1_ref.shape[0] * h1_ref.shape[1])   # 1 / full batch

    def lrelu(v):
        return jnp.where(v > 0, v, LRELU_SLOPE * v)

    # Packed per-feature vector rows (each used exactly once per pass):
    #   0: bc1   1: bc2   2: bm   3: b1   4: gamma1   5: beta1
    #   6: b2    7: gamma2   8: beta2   9: b3

    # ---------------- pass 0: cond net + modulation + Linear1 + BN1 stats -------
    @pl.when(k == 0)
    def _pass0():
        @pl.when(i == 0)
        def _init_stats():
            s1_ref[...] = jnp.zeros_like(s1_ref)
            s2_ref[...] = jnp.zeros_like(s2_ref)
            t1_ref[...] = jnp.zeros_like(t1_ref)
            t2_ref[...] = jnp.zeros_like(t2_ref)

        # condition_network: Linear -> LeakyReLU(0.2) -> Linear -> LeakyReLU(0.2)
        h = jnp.dot(cond_ref[...].astype(bf16), wc1_ref[...],
                    preferred_element_type=f32) + vecs_ref[0:1, 0:128]
        h = lrelu(h)
        h = jnp.dot(h.astype(bf16), wc2_ref[...],
                    preferred_element_type=f32) + vecs_ref[1:2, 0:128]
        h = lrelu(h)
        # modulation = sigmoid(Linear(128, 512)) -> stored for pass 1
        mod_ref[i] = jax.nn.sigmoid(
            jnp.dot(h.astype(bf16), wm_ref[...],
                    preferred_element_type=f32) + vecs_ref[2:3, 0:512])

        # main_network[0]: one fused Linear over [noise | condition]
        x = jnp.dot(xin_ref[...].astype(bf16), w1_ref[...],
                    preferred_element_type=f32) + vecs_ref[3:4, 0:512]
        h1_ref[i] = x
        # single-pass BN1 statistics: two independent reductions
        s1_ref[...] += jnp.sum(x, axis=0, keepdims=True)
        s2_ref[...] += jnp.sum(x * x, axis=0, keepdims=True)

    # ---------------- pass 1: BN1 -> ReLU -> *mod -> Linear2 + BN2 stats --------
    @pl.when(k == 1)
    def _pass1():
        mean = s1_ref[...] * inv_b
        var = s2_ref[...] * inv_b - mean * mean        # f32, biased (training mode)
        rstd = jax.lax.rsqrt(var + BN_EPS)
        x = h1_ref[i]
        x = (x - mean) * rstd * vecs_ref[4:5, 0:512] + vecs_ref[5:6, 0:512]
        x = jnp.maximum(x, 0.0) * mod_ref[i]
        x = jnp.dot(x.astype(bf16), w2_ref[...],
                    preferred_element_type=f32) + vecs_ref[6:7, 0:512]
        h2_ref[i] = x
        t1_ref[...] += jnp.sum(x, axis=0, keepdims=True)
        t2_ref[...] += jnp.sum(x * x, axis=0, keepdims=True)

    # ---------------- pass 2: BN2 -> ReLU -> Linear3 -> output ------------------
    @pl.when(k == 2)
    def _pass2():
        mean = t1_ref[...] * inv_b
        var = t2_ref[...] * inv_b - mean * mean
        rstd = jax.lax.rsqrt(var + BN_EPS)
        x = h2_ref[i]
        x = (x - mean) * rstd * vecs_ref[7:8, 0:512] + vecs_ref[8:9, 0:512]
        x = jnp.maximum(x, 0.0)
        out_ref[...] = (jnp.dot(x.astype(bf16), w3_ref[...],
                                preferred_element_type=f32)
                        + vecs_ref[9:10, 0:out_pad])


def generator_forward(noise, condition, params, output_shape):
    """noise: [B, latent_dim] f32, condition: [B, cond_dim] f32 -> [B, *output_shape] f32."""
    batch = noise.shape[0]
    latent_dim = noise.shape[1]
    cond_dim = condition.shape[1]
    fused_in = latent_dim + cond_dim
    out_dim = int(np.prod(output_shape))
    out_pad = params["w3"].shape[1]

    tile = _pick_batch_tile(batch)
    n_tiles = batch // tile
    assert tile * n_tiles == batch

    # Pre-concat so layer 1 is a single MXU push against the fused weight.
    # NOTE: when importing real PyTorch weights, w1 must be weight.T with rows
    # ordered exactly as this concat [noise | condition].
    xin = jnp.concatenate([noise, condition], axis=1)

    args = (xin, condition,
            params["wc1"], params["wc2"], params["wm"],
            params["w1"], params["w2"], params["w3"],
            params["vecs"])

    # Activation tiles advance with the batch-tile index; weights / packed vectors
    # use a constant index_map so they are DMA'd once and stay VMEM-resident.
    def act_spec(width):
        return pl.BlockSpec((tile, width), lambda k, i: (i, 0))

    def const_spec(arr):
        return pl.BlockSpec(arr.shape, lambda k, i: (0, 0))

    in_specs = [
        act_spec(fused_in),                # xin
        act_spec(cond_dim),                # condition
        const_spec(params["wc1"]),
        const_spec(params["wc2"]),
        const_spec(params["wm"]),
        const_spec(params["w1"]),
        const_spec(params["w2"]),
        const_spec(params["w3"]),
        const_spec(params["vecs"]),
    ]
    out_spec = pl.BlockSpec((tile, out_pad), lambda k, i: (i, 0))

    scratch_shapes = [
        pltpu.VMEM((n_tiles, tile, 512), jnp.float32),   # h1  (pre-BN1 activations)
        pltpu.VMEM((n_tiles, tile, 512), jnp.float32),   # h2  (pre-BN2 activations)
        pltpu.VMEM((n_tiles, tile, 512), jnp.float32),   # modulation gate
        pltpu.VMEM((1, 512), jnp.float32),               # s1 = sum(h1)
        pltpu.VMEM((1, 512), jnp.float32),               # s2 = sum(h1^2)
        pltpu.VMEM((1, 512), jnp.float32),               # t1 = sum(h2)
        pltpu.VMEM((1, 512), jnp.float32),               # t2 = sum(h2^2)
    ]

    flops = 2 * batch * (cond_dim * 128 + 128 * 128 + 128 * 512
                         + fused_in * 512 + 512 * 512 + 512 * out_pad)
    bytes_accessed = int(sum(int(np.prod(a.shape)) * a.dtype.itemsize for a in args)
                         + batch * out_pad * 4)
    cost = pl.CostEstimate(flops=int(flops),
                           transcendentals=int(batch * 512 + 2 * 512),
                           bytes_accessed=bytes_accessed)

    # VMEM budget: double-buffered inputs + scratch + output tiles.
    weight_bytes = int(sum(int(np.prod(a.shape)) * a.dtype.itemsize for a in args[2:]))
    scratch_bytes = (3 * batch * 512 + 4 * 512) * 4
    act_bytes = 2 * 2 * tile * (fused_in + cond_dim + out_pad) * 4
    vmem_need = 2 * weight_bytes + scratch_bytes + act_bytes

    # The batch-tile axis can NOT be "parallel": training-mode BatchNorm couples
    # every tile through the shared statistic accumulators, so megacore sharding
    # (v7x, 2 TCs) would leave each core with incomplete statistics.  Both axes
    # are therefore sequential ("arbitrary").
    cp_kwargs = dict(dimension_semantics=("arbitrary", "arbitrary"))
    if vmem_need > 12 * 1024 * 1024:
        # Generation-safe clamp: never exceed physical per-core VMEM (64 MiB on
        # v7x) minus headroom; only raised when the footprint actually needs it.
        cap = _vmem_cap_bytes()
        cp_kwargs["vmem_limit_bytes"] = int(
            max(16 * 1024 * 1024,
                min(int(vmem_need * 1.25), cap - 8 * 1024 * 1024)))
    compiler_params = pltpu.CompilerParams(**cp_kwargs)

    flat = pl.pallas_call(
        _generator_kernel,
        out_shape=jax.ShapeDtypeStruct((batch, out_pad), jnp.float32),
        grid=(3, n_tiles),                 # pass axis outermost (slowest)
        in_specs=in_specs,
        out_specs=out_spec,
        scratch_shapes=scratch_shapes,
        cost_estimate=cost,
        compiler_params=compiler_params,
    )(*args)

    return flat[:, :out_dim].reshape((batch,) + tuple(output_shape))


def init_params(key, latent_dim, cond_dim, output_shape):
    """Synthetic parameter init. Weight matrices ~N(0, 0.02) stored in bf16;
    biases / BN params in f32, packed into a single [10, W] block."""
    out_dim = int(np.prod(output_shape))
    out_pad = _round_up(out_dim, 128)
    vec_w = max(512, out_pad)
    keys = jax.random.split(key, 11)
    s = 0.02

    def w(k, shape):
        return (s * jax.random.normal(k, shape, dtype=jnp.float32)).astype(jnp.bfloat16)

    def v(k, n):
        return s * jax.random.normal(k, (1, n), dtype=jnp.float32)

    wc1 = w(keys[0], (cond_dim, 128));             bc1 = v(keys[1], 128)
    wc2 = w(keys[2], (128, 128));                  bc2 = v(keys[3], 128)
    wm = w(keys[4], (128, 512));                   bm = v(keys[5], 512)
    w1 = w(keys[6], (latent_dim + cond_dim, 512)); b1 = v(keys[7], 512)
    w2 = w(keys[8], (512, 512));                   b2 = v(keys[9], 512)
    w3 = jnp.pad(w(keys[10], (512, out_dim)), ((0, 0), (0, out_pad - out_dim)))
    b3 = jnp.zeros((1, out_pad), jnp.float32)
    gamma = jnp.ones((1, 512), jnp.float32)
    beta = jnp.zeros((1, 512), jnp.float32)

    def pad_row(row):
        return jnp.pad(row, ((0, 0), (0, vec_w - row.shape[1])))

    vecs = jnp.concatenate(
        [pad_row(bc1), pad_row(bc2), pad_row(bm),
         pad_row(b1), pad_row(gamma), pad_row(beta),
         pad_row(b2), pad_row(gamma), pad_row(beta),
         pad_row(b3)], axis=0)  # [10, vec_w] f32

    return {"wc1": wc1, "wc2": wc2, "wm": wm, "w1": w1, "w2": w2, "w3": w3,
            "vecs": vecs}


def _unpack_vecs(p, out_pad):
    V = p["vecs"]
    return dict(bc1=V[0:1, :128], bc2=V[1:2, :128], bm=V[2:3, :512],
                b1=V[3:4, :512], g1=V[4:5, :512], be1=V[5:6, :512],
                b2=V[6:7, :512], g2=V[7:8, :512], be2=V[8:9, :512],
                b3=V[9:10, :out_pad])


def _reference_forward(noise, condition, p, out_dim, match_kernel_dtypes):
    """Pure-JAX reference of the PyTorch forward (training-mode BatchNorm).

    match_kernel_dtypes=True  -> bf16 matmul operands / f32 accumulate and the
                                 kernel's single-pass var = E[x^2] - mean^2.
    match_kernel_dtypes=False -> full-f32 math (PyTorch-semantics oracle).
    """
    out_pad = p["w3"].shape[1]
    v = _unpack_vecs(p, out_pad)

    if match_kernel_dtypes:
        def mm(a, b):
            return jnp.dot(a.astype(jnp.bfloat16), b, preferred_element_type=jnp.float32)

        def bn(x, g, b):
            m = x.mean(0, keepdims=True)
            var = (x * x).mean(0, keepdims=True) - m * m
            return (x - m) * jax.lax.rsqrt(var + BN_EPS) * g + b
    else:
        def mm(a, b):
            return jnp.dot(a, b.astype(jnp.float32), preferred_element_type=jnp.float32)

        def bn(x, g, b):
            m = x.mean(0, keepdims=True)
            var = ((x - m) ** 2).mean(0, keepdims=True)
            return (x - m) / jnp.sqrt(var + BN_EPS) * g + b

    lrelu = lambda t: jnp.where(t > 0, t, LRELU_SLOPE * t)

    h = lrelu(mm(condition, p["wc1"]) + v["bc1"])
    h = lrelu(mm(h, p["wc2"]) + v["bc2"])
    mod = jax.nn.sigmoid(mm(h, p["wm"]) + v["bm"])

    x = mm(jnp.concatenate([noise, condition], axis=1), p["w1"]) + v["b1"]
    x = bn(x, v["g1"], v["be1"])
    x = jnp.maximum(x, 0.0) * mod

    x = mm(x, p["w2"]) + v["b2"]
    x = bn(x, v["g2"], v["be2"])
    x = jnp.maximum(x, 0.0)

    out = mm(x, p["w3"]) + v["b3"]
    return out[:, :out_dim]


if __name__ == "__main__":
    latent_dim = 16
    cond_dim = 8
    output_shape = (4, 8, 8)   # prod = 256 (lane-aligned; generic padding path)
    batch = 8                  # NOTE: real training should use a multiple of 256
                               # (v6e/v7x MXU rows) or at least 16 (bf16 sublanes);
                               # never pad the batch (training-mode BN statistics).

    key = jax.random.PRNGKey(0)
    k_noise, k_cond, k_params = jax.random.split(key, 3)

    noise = jax.random.normal(k_noise, (batch, latent_dim), dtype=jnp.float32)
    condition = jax.random.normal(k_cond, (batch, cond_dim), dtype=jnp.float32)
    params = init_params(k_params, latent_dim, cond_dim, output_shape)

    out = generator_forward(noise, condition, params, output_shape)
    out = jax.block_until_ready(out)
    assert out.shape == (batch,) + output_shape, out.shape

    out_dim = int(np.prod(output_shape))
    # Exact-math check against a reference that mirrors the kernel's bf16 matmuls
    # and single-pass BN statistics.
    ref_match = _reference_forward(noise, condition, params, out_dim, True).reshape(out.shape)
    np.testing.assert_allclose(np.asarray(out), np.asarray(ref_match), rtol=5e-3, atol=5e-3)
    # Semantic check against the full-f32 PyTorch-style forward (bf16 rounding tolerance).
    ref_f32 = _reference_forward(noise, condition, params, out_dim, False).reshape(out.shape)
    np.testing.assert_allclose(np.asarray(out), np.asarray(ref_f32), rtol=5e-2, atol=5e-2)

    print("KERNEL_OK")
</pallas_src>

<mosaic_0001>
module attributes {stable_mosaic.version = 11 : i64} {
  func.func @_generator_kernel(%arg0: i32, %arg1: i32, %arg2: memref<8x24xf32, #tpu.memory_space<vmem>>, %arg3: memref<8x8xf32, #tpu.memory_space<vmem>>, %arg4: memref<8x128xbf16, #tpu.memory_space<vmem>>, %arg5: memref<128x128xbf16, #tpu.memory_space<vmem>>, %arg6: memref<128x512xbf16, #tpu.memory_space<vmem>>, %arg7: memref<24x512xbf16, #tpu.memory_space<vmem>>, %arg8: memref<512x512xbf16, #tpu.memory_space<vmem>>, %arg9: memref<512x256xbf16, #tpu.memory_space<vmem>>, %arg10: memref<10x512xf32, #tpu.memory_space<vmem>>, %arg11: memref<8x256xf32, #tpu.memory_space<vmem>>, %arg12: memref<1x8x512xf32, #tpu.memory_space<vmem>>, %arg13: memref<1x8x512xf32, #tpu.memory_space<vmem>>, %arg14: memref<1x8x512xf32, #tpu.memory_space<vmem>>, %arg15: memref<1x512xf32, #tpu.memory_space<vmem>>, %arg16: memref<1x512xf32, #tpu.memory_space<vmem>>, %arg17: memref<1x512xf32, #tpu.memory_space<vmem>>, %arg18: memref<1x512xf32, #tpu.memory_space<vmem>>) attributes {dimension_semantics = [#tpu.dimension_semantics<arbitrary>, #tpu.dimension_semantics<arbitrary>], iteration_bounds = array<i64: 3, 1>, scalar_prefetch = 0 : i64, scratch_operands = 7 : i64, tpu.core_type = #tpu.core_type<tc>, window_params = [{transform_indices = @transform_0, window_bounds = array<i64: 8, 24>}, {transform_indices = @transform_1, window_bounds = array<i64: 8, 8>}, {pipeline_mode = #tpu.pipeline_mode<synchronous>, transform_indices = @transform_2, window_bounds = array<i64: 8, 128>}, {pipeline_mode = #tpu.pipeline_mode<synchronous>, transform_indices = @transform_3, window_bounds = array<i64: 128, 128>}, {pipeline_mode = #tpu.pipeline_mode<synchronous>, transform_indices = @transform_4, window_bounds = array<i64: 128, 512>}, {pipeline_mode = #tpu.pipeline_mode<synchronous>, transform_indices = @transform_5, window_bounds = array<i64: 24, 512>}, {pipeline_mode = #tpu.pipeline_mode<synchronous>, transform_indices = @transform_6, window_bounds = array<i64: 512, 512>}, {pipeline_mode = #tpu.pipeline_mode<synchronous>, transform_indices = @transform_7, window_bounds = array<i64: 512, 256>}, {pipeline_mode = #tpu.pipeline_mode<synchronous>, transform_indices = @transform_8, window_bounds = array<i64: 10, 512>}, {transform_indices = @transform_9, window_bounds = array<i64: 8, 256>}]} {
    %c0_i32 = arith.constant 0 : i32
    %0 = arith.cmpi eq, %arg0, %c0_i32 : i32
    %1 = arith.extui %0 : i1 to i32
    %c0_i32_0 = arith.constant 0 : i32
    %2 = arith.cmpi ne, %1, %c0_i32_0 : i32
    scf.if %2 {
      %c0_i32_3 = arith.constant 0 : i32
      %9 = arith.cmpi eq, %arg1, %c0_i32_3 : i32
      %10 = arith.extui %9 : i1 to i32
      %c0_i32_4 = arith.constant 0 : i32
      %11 = arith.cmpi ne, %10, %c0_i32_4 : i32
      scf.if %11 {
        %cst_43 = arith.constant 0.000000e+00 : f32
        %72 = vector.broadcast %cst_43 : f32 to vector<1x512xf32>
        %c0_44 = arith.constant 0 : index
        %c0_45 = arith.constant 0 : index
        %73 = vector.load %arg15[%c0_44, %c0_45] : memref<1x512xf32, #tpu.memory_space<vmem>>, vector<1x512xf32>
        tpu.vector_store %arg15[%c0_44, %c0_45], %72 {strides = array<i32>} : memref<1x512xf32, #tpu.memory_space<vmem>>, vector<1x512xf32>,
        %cst_46 = arith.constant 0.000000e+00 : f32
        %74 = vector.broadcast %cst_46 : f32 to vector<1x512xf32>
        %c0_47 = arith.constant 0 : index
        %c0_48 = arith.constant 0 : index
        %75 = vector.load %arg16[%c0_47, %c0_48] : memref<1x512xf32, #tpu.memory_space<vmem>>, vector<1x512xf32>
        tpu.vector_store %arg16[%c0_47, %c0_48], %74 {strides = array<i32>} : memref<1x512xf32, #tpu.memory_space<vmem>>, vector<1x512xf32>,
        %cst_49 = arith.constant 0.000000e+00 : f32
        %76 = vector.broadcast %cst_49 : f32 to vector<1x512xf32>
        %c0_50 = arith.constant 0 : index
        %c0_51 = arith.constant 0 : index
        %77 = vector.load %arg17[%c0_50, %c0_51] : memref<1x512xf32, #tpu.memory_space<vmem>>, vector<1x512xf32>
        tpu.vector_store %arg17[%c0_50, %c0_51], %76 {strides = array<i32>} : memref<1x512xf32, #tpu.memory_space<vmem>>, vector<1x512xf32>,
        %cst_52 = arith.constant 0.000000e+00 : f32
        %78 = vector.broadcast %cst_52 : f32 to vector<1x512xf32>
        %c0_53 = arith.constant 0 : index
        %c0_54 = arith.constant 0 : index
        %79 = vector.load %arg18[%c0_53, %c0_54] : memref<1x512xf32, #tpu.memory_space<vmem>>, vector<1x512xf32>
        tpu.vector_store %arg18[%c0_53, %c0_54], %78 {strides = array<i32>} : memref<1x512xf32, #tpu.memory_space<vmem>>, vector<1x512xf32>,
      } else {
      }
      %c0 = arith.constant 0 : index
      %c0_5 = arith.constant 0 : index
      %12 = vector.load %arg3[%c0, %c0_5] : memref<8x8xf32, #tpu.memory_space<vmem>>, vector<8x8xf32>
      %13 = arith.truncf %12 : vector<8x8xf32> to vector<8x8xbf16>
      %c0_6 = arith.constant 0 : index
      %c0_7 = arith.constant 0 : index
      %14 = vector.load %arg4[%c0_6, %c0_7] : memref<8x128xbf16, #tpu.memory_space<vmem>>, vector<8x128xbf16>
      %cst = arith.constant dense<0.000000e+00> : vector<8x128xf32>
      %15 = tpu.matmul %13, %14, %cst {dimension_numbers = #tpu.dot_dimension_numbers<[1], [0], [0], [1], [0, 0, 1, 1], [], []>} : vector<8x8xbf16>, vector<8x128xbf16>, vector<8x128xf32> -> vector<8x128xf32>
      %c0_8 = arith.constant 0 : index
      %c0_9 = arith.constant 0 : index
      %16 = vector.load %arg10[%c0_8, %c0_9] : memref<10x512xf32, #tpu.memory_space<vmem>>, vector<1x128xf32>
      %17 = vector.broadcast %16 : vector<1x128xf32> to vector<8x128xf32>
      %18 = arith.addf %15, %17 : vector<8x128xf32>
      %cst_10 = arith.constant 0.000000e+00 : f32
      %19 = vector.broadcast %cst_10 : f32 to vector<8x128xf32>
      %20 = arith.cmpf ogt, %18, %19 : vector<8x128xf32>
      %cst_11 = arith.constant 2.000000e-01 : f32
      %21 = vector.broadcast %cst_11 : f32 to vector<8x128xf32>
      %22 = arith.mulf %21, %18 : vector<8x128xf32>
      %23 = arith.select %20, %18, %22 : vector<8x128xi1>, vector<8x128xf32>
      %24 = arith.truncf %23 : vector<8x128xf32> to vector<8x128xbf16>
      %c0_12 = arith.constant 0 : index
      %c0_13 = arith.constant 0 : index
      %25 = vector.load %arg5[%c0_12, %c0_13] : memref<128x128xbf16, #tpu.memory_space<vmem>>, vector<128x128xbf16>
      %cst_14 = arith.constant dense<0.000000e+00> : vector<8x128xf32>
      %26 = tpu.matmul %24, %25, %cst_14 {dimension_numbers = #tpu.dot_dimension_numbers<[1], [0], [0], [1], [0, 0, 1, 1], [], []>} : vector<8x128xbf16>, vector<128x128xbf16>, vector<8x128xf32> -> vector<8x128xf32>
      %c1 = arith.constant 1 : index
      %c0_15 = arith.constant 0 : index
      %27 = vector.load %arg10[%c1, %c0_15] : memref<10x512xf32, #tpu.memory_space<vmem>>, vector<1x128xf32>
      %28 = vector.broadcast %27 : vector<1x128xf32> to vector<8x128xf32>
      %29 = arith.addf %26, %28 : vector<8x128xf32>
      %cst_16 = arith.constant 0.000000e+00 : f32
      %30 = vector.broadcast %cst_16 : f32 to vector<8x128xf32>
      %31 = arith.cmpf ogt, %29, %30 : vector<8x128xf32>
      %cst_17 = arith.constant 2.000000e-01 : f32
      %32 = vector.broadcast %cst_17 : f32 to vector<8x128xf32>
      %33 = arith.mulf %32, %29 : vector<8x128xf32>
      %34 = arith.select %31, %29, %33 : vector<8x128xi1>, vector<8x128xf32>
      %35 = arith.truncf %34 : vector<8x128xf32> to vector<8x128xbf16>
      %c0_18 = arith.constant 0 : index
      %c0_19 = arith.constant 0 : index
      %36 = vector.load %arg6[%c0_18, %c0_19] : memref<128x512xbf16, #tpu.memory_space<vmem>>, vector<128x512xbf16>
      %cst_20 = arith.constant dense<0.000000e+00> : vector<8x512xf32>
      %37 = tpu.matmul %35, %36, %cst_20 {dimension_numbers = #tpu.dot_dimension_numbers<[1], [0], [0], [1], [0, 0, 1, 1], [], []>} : vector<8x128xbf16>, vector<128x512xbf16>, vector<8x512xf32> -> vector<8x512xf32>
      %c2 = arith.constant 2 : index
      %c0_21 = arith.constant 0 : index
      %38 = vector.load %arg10[%c2, %c0_21] : memref<10x512xf32, #tpu.memory_space<vmem>>, vector<1x512xf32>
      %39 = vector.broadcast %38 : vector<1x512xf32> to vector<8x512xf32>
      %40 = arith.addf %37, %39 : vector<8x512xf32>
      %41 = arith.negf %40 : vector<8x512xf32>
      %42 = math.exp %41 : vector<8x512xf32>
      %cst_22 = arith.constant 1.000000e+00 : f32
      %43 = vector.broadcast %cst_22 : f32 to vector<8x512xf32>
      %44 = arith.addf %43, %42 : vector<8x512xf32>
      %45 = arith.divf %43, %44 : vector<8x512xf32>
      %46 = arith.index_cast %arg1 : i32 to index
      %c0_23 = arith.constant 0 : index
      %c0_24 = arith.constant 0 : index
      %47 = vector.load %arg14[%46, %c0_23, %c0_24] : memref<1x8x512xf32, #tpu.memory_space<vmem>>, vector<1x8x512xf32>
      %48 = vector.shape_cast %47 : vector<1x8x512xf32> to vector<8x512xf32>
      %49 = vector.shape_cast %45 : vector<8x512xf32> to vector<1x8x512xf32>
      tpu.vector_store %arg14[%46, %c0_23, %c0_24], %49 {strides = array<i32>} : memref<1x8x512xf32, #tpu.memory_space<vmem>>, vector<1x8x512xf32>,
      %c0_25 = arith.constant 0 : index
      %c0_26 = arith.constant 0 : index
      %50 = vector.load %arg2[%c0_25, %c0_26] : memref<8x24xf32, #tpu.memory_space<vmem>>, vector<8x24xf32>
      %51 = arith.truncf %50 : vector<8x24xf32> to vector<8x24xbf16>
      %c0_27 = arith.constant 0 : index
      %c0_28 = arith.constant 0 : index
      %52 = vector.load %arg7[%c0_27, %c0_28] : memref<24x512xbf16, #tpu.memory_space<vmem>>, vector<24x512xbf16>
      %cst_29 = arith.constant dense<0.000000e+00> : vector<8x512xf32>
      %53 = tpu.matmul %51, %52, %cst_29 {dimension_numbers = #tpu.dot_dimension_numbers<[1], [0], [0], [1], [0, 0, 1, 1], [], []>} : vector<8x24xbf16>, vector<24x512xbf16>, vector<8x512xf32> -> vector<8x512xf32>
      %c3 = arith.constant 3 : index
      %c0_30 = arith.constant 0 : index
      %54 = vector.load %arg10[%c3, %c0_30] : memref<10x512xf32, #tpu.memory_space<vmem>>, vector<1x512xf32>
      %55 = vector.broadcast %54 : vector<1x512xf32> to vector<8x512xf32>
      %56 = arith.addf %53, %55 : vector<8x512xf32>
      %57 = arith.index_cast %arg1 : i32 to index
      %c0_31 = arith.constant 0 : index
      %c0_32 = arith.constant 0 : index
      %58 = vector.load %arg12[%57, %c0_31, %c0_32] : memref<1x8x512xf32, #tpu.memory_space<vmem>>, vector<1x8x512xf32>
      %59 = vector.shape_cast %58 : vector<1x8x512xf32> to vector<8x512xf32>
      %60 = vector.shape_cast %56 : vector<8x512xf32> to vector<1x8x512xf32>
      tpu.vector_store %arg12[%57, %c0_31, %c0_32], %60 {strides = array<i32>} : memref<1x8x512xf32, #tpu.memory_space<vmem>>, vector<1x8x512xf32>,
      %c0_33 = arith.constant 0 : index
      %c0_34 = arith.constant 0 : index
      %61 = vector.load %arg15[%c0_33, %c0_34] : memref<1x512xf32, #tpu.memory_space<vmem>>, vector<1x512xf32>
      %cst_35 = arith.constant dense<0.000000e+00> : vector<512xf32>
      %62 = vector.multi_reduction <add>, %56, %cst_35 [0] : vector<8x512xf32> to vector<512xf32>
      %63 = vector.shape_cast %62 : vector<512xf32> to vector<1x512xf32>
      %64 = arith.addf %61, %63 : vector<1x512xf32>
      %c0_36 = arith.constant 0 : index
      %c0_37 = arith.constant 0 : index
      %65 = vector.load %arg15[%c0_36, %c0_37] : memref<1x512xf32, #tpu.memory_space<vmem>>, vector<1x512xf32>
      tpu.vector_store %arg15[%c0_36, %c0_37], %64 {strides = array<i32>} : memref<1x512xf32, #tpu.memory_space<vmem>>, vector<1x512xf32>,
      %c0_38 = arith.constant 0 : index
      %c0_39 = arith.constant 0 : index
      %66 = vector.load %arg16[%c0_38, %c0_39] : memref<1x512xf32, #tpu.memory_space<vmem>>, vector<1x512xf32>
      %67 = arith.mulf %56, %56 : vector<8x512xf32>
      %cst_40 = arith.constant dense<0.000000e+00> : vector<512xf32>
      %68 = vector.multi_reduction <add>, %67, %cst_40 [0] : vector<8x512xf32> to vector<512xf32>
      %69 = vector.shape_cast %68 : vector<512xf32> to vector<1x512xf32>
      %70 = arith.addf %66, %69 : vector<1x512xf32>
      %c0_41 = arith.constant 0 : index
      %c0_42 = arith.constant 0 : index
      %71 = vector.load %arg16[%c0_41, %c0_42] : memref<1x512xf32, #tpu.memory_space<vmem>>, vector<1x512xf32>
      tpu.vector_store %arg16[%c0_41, %c0_42], %70 {strides = array<i32>} : memref<1x512xf32, #tpu.memory_space<vmem>>, vector<1x512xf32>,
    } else {
    }
    %c1_i32 = arith.constant 1 : i32
    %3 = arith.cmpi eq, %arg0, %c1_i32 : i32
    %4 = arith.extui %3 : i1 to i32
    %c0_i32_1 = arith.constant 0 : i32
    %5 = arith.cmpi ne, %4, %c0_i32_1 : i32
    scf.if %5 {
      %c0 = arith.constant 0 : index
      %c0_3 = arith.constant 0 : index
      %9 = vector.load %arg15[%c0, %c0_3] : memref<1x512xf32, #tpu.memory_space<vmem>>, vector<1x512xf32>
      %cst = arith.constant 1.250000e-01 : f32
      %10 = vector.broadcast %cst : f32 to vector<1x512xf32>
      %11 = arith.mulf %9, %10 : vector<1x512xf32>
      %c0_4 = arith.constant 0 : index
      %c0_5 = arith.constant 0 : index
      %12 = vector.load %arg16[%c0_4, %c0_5] : memref<1x512xf32, #tpu.memory_space<vmem>>, vector<1x512xf32>
      %cst_6 = arith.constant 1.250000e-01 : f32
      %13 = vector.broadcast %cst_6 : f32 to vector<1x512xf32>
      %14 = arith.mulf %12, %13 : vector<1x512xf32>
      %15 = arith.mulf %11, %11 : vector<1x512xf32>
      %16 = arith.subf %14, %15 : vector<1x512xf32>
      %cst_7 = arith.constant 9.99999974E-6 : f32
      %17 = vector.broadcast %cst_7 : f32 to vector<1x512xf32>
      %18 = arith.addf %16, %17 : vector<1x512xf32>
      %19 = math.rsqrt %18 : vector<1x512xf32>
      %20 = arith.index_cast %arg1 : i32 to index
      %c0_8 = arith.constant 0 : index
      %c0_9 = arith.constant 0 : index
      %21 = vector.load %arg12[%20, %c0_8, %c0_9] : memref<1x8x512xf32, #tpu.memory_space<vmem>>, vector<1x8x512xf32>
      %22 = vector.shape_cast %21 : vector<1x8x512xf32> to vector<8x512xf32>
      %23 = vector.broadcast %11 : vector<1x512xf32> to vector<8x512xf32>
      %24 = arith.subf %22, %23 : vector<8x512xf32>
      %25 = vector.broadcast %19 : vector<1x512xf32> to vector<8x512xf32>
      %26 = arith.mulf %24, %25 : vector<8x512xf32>
      %c4 = arith.constant 4 : index
      %c0_10 = arith.constant 0 : index
      %27 = vector.load %arg10[%c4, %c0_10] : memref<10x512xf32, #tpu.memory_space<vmem>>, vector<1x512xf32>
      %28 = vector.broadcast %27 : vector<1x512xf32> to vector<8x512xf32>
      %29 = arith.mulf %26, %28 : vector<8x512xf32>
      %c5 = arith.constant 5 : index
      %c0_11 = arith.constant 0 : index
      %30 = vector.load %arg10[%c5, %c0_11] : memref<10x512xf32, #tpu.memory_space<vmem>>, vector<1x512xf32>
      %31 = vector.broadcast %30 : vector<1x512xf32> to vector<8x512xf32>
      %32 = arith.addf %29, %31 : vector<8x512xf32>
      %cst_12 = arith.constant 0.000000e+00 : f32
      %33 = vector.broadcast %cst_12 : f32 to vector<8x512xf32>
      %34 = arith.maximumf %32, %33 : vector<8x512xf32>
      %35 = arith.index_cast %arg1 : i32 to index
      %c0_13 = arith.constant 0 : index
      %c0_14 = arith.constant 0 : index
      %36 = vector.load %arg14[%35, %c0_13, %c0_14] : memref<1x8x512xf32, #tpu.memory_space<vmem>>, vector<1x8x512xf32>
      %37 = vector.shape_cast %36 : vector<1x8x512xf32> to vector<8x512xf32>
      %38 = arith.mulf %34, %37 : vector<8x512xf32>
      %39 = arith.truncf %38 : vector<8x512xf32> to vector<8x512xbf16>
      %c0_15 = arith.constant 0 : index
      %c0_16 = arith.constant 0 : index
      %40 = vector.load %arg8[%c0_15, %c0_16] : memref<512x512xbf16, #tpu.memory_space<vmem>>, vector<512x512xbf16>
      %cst_17 = arith.constant dense<0.000000e+00> : vector<8x512xf32>
      %41 = tpu.matmul %39, %40, %cst_17 {dimension_numbers = #tpu.dot_dimension_numbers<[1], [0], [0], [1], [0, 0, 1, 1], [], []>} : vector<8x512xbf16>, vector<512x512xbf16>, vector<8x512xf32> -> vector<8x512xf32>
      %c6 = arith.constant 6 : index
      %c0_18 = arith.constant 0 : index
      %42 = vector.load %arg10[%c6, %c0_18] : memref<10x512xf32, #tpu.memory_space<vmem>>, vector<1x512xf32>
      %43 = vector.broadcast %42 : vector<1x512xf32> to vector<8x512xf32>
      %44 = arith.addf %41, %43 : vector<8x512xf32>
      %45 = arith.index_cast %arg1 : i32 to index
      %c0_19 = arith.constant 0 : index
      %c0_20 = arith.constant 0 : index
      %46 = vector.load %arg13[%45, %c0_19, %c0_20] : memref<1x8x512xf32, #tpu.memory_space<vmem>>, vector<1x8x512xf32>
      %47 = vector.shape_cast %46 : vector<1x8x512xf32> to vector<8x512xf32>
      %48 = vector.shape_cast %44 : vector<8x512xf32> to vector<1x8x512xf32>
      tpu.vector_store %arg13[%45, %c0_19, %c0_20], %48 {strides = array<i32>} : memref<1x8x512xf32, #tpu.memory_space<vmem>>, vector<1x8x512xf32>,
      %c0_21 = arith.constant 0 : index
      %c0_22 = arith.constant 0 : index
      %49 = vector.load %arg17[%c0_21, %c0_22] : memref<1x512xf32, #tpu.memory_space<vmem>>, vector<1x512xf32>
      %cst_23 = arith.constant dense<0.000000e+00> : vector<512xf32>
      %50 = vector.multi_reduction <add>, %44, %cst_23 [0] : vector<8x512xf32> to vector<512xf32>
      %51 = vector.shape_cast %50 : vector<512xf32> to vector<1x512xf32>
      %52 = arith.addf %49, %51 : vector<1x512xf32>
      %c0_24 = arith.constant 0 : index
      %c0_25 = arith.constant 0 : index
      %53 = vector.load %arg17[%c0_24, %c0_25] : memref<1x512xf32, #tpu.memory_space<vmem>>, vector<1x512xf32>
      tpu.vector_store %arg17[%c0_24, %c0_25], %52 {strides = array<i32>} : memref<1x512xf32, #tpu.memory_space<vmem>>, vector<1x512xf32>,
      %c0_26 = arith.constant 0 : index
      %c0_27 = arith.constant 0 : index
      %54 = vector.load %arg18[%c0_26, %c0_27] : memref<1x512xf32, #tpu.memory_space<vmem>>, vector<1x512xf32>
      %55 = arith.mulf %44, %44 : vector<8x512xf32>
      %cst_28 = arith.constant dense<0.000000e+00> : vector<512xf32>
      %56 = vector.multi_reduction <add>, %55, %cst_28 [0] : vector<8x512xf32> to vector<512xf32>
      %57 = vector.shape_cast %56 : vector<512xf32> to vector<1x512xf32>
      %58 = arith.addf %54, %57 : vector<1x512xf32>
      %c0_29 = arith.constant 0 : index
      %c0_30 = arith.constant 0 : index
      %59 = vector.load %arg18[%c0_29, %c0_30] : memref<1x512xf32, #tpu.memory_space<vmem>>, vector<1x512xf32>
      tpu.vector_store %arg18[%c0_29, %c0_30], %58 {strides = array<i32>} : memref<1x512xf32, #tpu.memory_space<vmem>>, vector<1x512xf32>,
    } else {
    }
    %c2_i32 = arith.constant 2 : i32
    %6 = arith.cmpi eq, %arg0, %c2_i32 : i32
    %7 = arith.extui %6 : i1 to i32
    %c0_i32_2 = arith.constant 0 : i32
    %8 = arith.cmpi ne, %7, %c0_i32_2 : i32
    scf.if %8 {
      %c0 = arith.constant 0 : index
      %c0_3 = arith.constant 0 : index
      %9 = vector.load %arg17[%c0, %c0_3] : memref<1x512xf32, #tpu.memory_space<vmem>>, vector<1x512xf32>
      %cst = arith.constant 1.250000e-01 : f32
      %10 = vector.broadcast %cst : f32 to vector<1x512xf32>
      %11 = arith.mulf %9, %10 : vector<1x512xf32>
      %c0_4 = arith.constant 0 : index
      %c0_5 = arith.constant 0 : index
      %12 = vector.load %arg18[%c0_4, %c0_5] : memref<1x512xf32, #tpu.memory_space<vmem>>, vector<1x512xf32>
      %cst_6 = arith.constant 1.250000e-01 : f32
      %13 = vector.broadcast %cst_6 : f32 to vector<1x512xf32>
      %14 = arith.mulf %12, %13 : vector<1x512xf32>
      %15 = arith.mulf %11, %11 : vector<1x512xf32>
      %16 = arith.subf %14, %15 : vector<1x512xf32>
      %cst_7 = arith.constant 9.99999974E-6 : f32
      %17 = vector.broadcast %cst_7 : f32 to vector<1x512xf32>
      %18 = arith.addf %16, %17 : vector<1x512xf32>
      %19 = math.rsqrt %18 : vector<1x512xf32>
      %20 = arith.index_cast %arg1 : i32 to index
      %c0_8 = arith.constant 0 : index
      %c0_9 = arith.constant 0 : index
      %21 = vector.load %arg13[%20, %c0_8, %c0_9] : memref<1x8x512xf32, #tpu.memory_space<vmem>>, vector<1x8x512xf32>
      %22 = vector.shape_cast %21 : vector<1x8x512xf32> to vector<8x512xf32>
      %23 = vector.broadcast %11 : vector<1x512xf32> to vector<8x512xf32>
      %24 = arith.subf %22, %23 : vector<8x512xf32>
      %25 = vector.broadcast %19 : vector<1x512xf32> to vector<8x512xf32>
      %26 = arith.mulf %24, %25 : vector<8x512xf32>
      %c7 = arith.constant 7 : index
      %c0_10 = arith.constant 0 : index
      %27 = vector.load %arg10[%c7, %c0_10] : memref<10x512xf32, #tpu.memory_space<vmem>>, vector<1x512xf32>
      %28 = vector.broadcast %27 : vector<1x512xf32> to vector<8x512xf32>
      %29 = arith.mulf %26, %28 : vector<8x512xf32>
      %c8 = arith.constant 8 : index
      %c0_11 = arith.constant 0 : index
      %30 = vector.load %arg10[%c8, %c0_11] : memref<10x512xf32, #tpu.memory_space<vmem>>, vector<1x512xf32>
      %31 = vector.broadcast %30 : vector<1x512xf32> to vector<8x512xf32>
      %32 = arith.addf %29, %31 : vector<8x512xf32>
      %cst_12 = arith.constant 0.000000e+00 : f32
      %33 = vector.broadcast %cst_12 : f32 to vector<8x512xf32>
      %34 = arith.maximumf %32, %33 : vector<8x512xf32>
      %35 = arith.truncf %34 : vector<8x512xf32> to vector<8x512xbf16>
      %c0_13 = arith.constant 0 : index
      %c0_14 = arith.constant 0 : index
      %36 = vector.load %arg9[%c0_13, %c0_14] : memref<512x256xbf16, #tpu.memory_space<vmem>>, vector<512x256xbf16>
      %cst_15 = arith.constant dense<0.000000e+00> : vector<8x256xf32>
      %37 = tpu.matmul %35, %36, %cst_15 {dimension_numbers = #tpu.dot_dimension_numbers<[1], [0], [0], [1], [0, 0, 1, 1], [], []>} : vector<8x512xbf16>, vector<512x256xbf16>, vector<8x256xf32> -> vector<8x256xf32>
      %c9 = arith.constant 9 : index
      %c0_16 = arith.constant 0 : index
      %38 = vector.load %arg10[%c9, %c0_16] : memref<10x512xf32, #tpu.memory_space<vmem>>, vector<1x256xf32>
      %39 = vector.broadcast %38 : vector<1x256xf32> to vector<8x256xf32>
      %40 = arith.addf %37, %39 : vector<8x256xf32>
      %c0_17 = arith.constant 0 : index
      %c0_18 = arith.constant 0 : index
      %41 = vector.load %arg11[%c0_17, %c0_18] : memref<8x256xf32, #tpu.memory_space<vmem>>, vector<8x256xf32>
      tpu.vector_store %arg11[%c0_17, %c0_18], %40 {strides = array<i32>} : memref<8x256xf32, #tpu.memory_space<vmem>>, vector<8x256xf32>,
    } else {
    }
    return
  }
  func.func @transform_0(%arg0: i32, %arg1: i32) -> (i32, i32) {
    %c0_i32 = arith.constant 0 : i32
    %c0_i32_0 = arith.constant 0 : i32
    return %arg1, %c0_i32 : i32, i32
  }
  func.func @transform_1(%arg0: i32, %arg1: i32) -> (i32, i32) {
    %c0_i32 = arith.constant 0 : i32
    %c0_i32_0 = arith.constant 0 : i32
    return %arg1, %c0_i32 : i32, i32
  }
  func.func @transform_2(%arg0: i32, %arg1: i32) -> (i32, i32) {
    %c0_i32 = arith.constant 0 : i32
    %c0_i32_0 = arith.constant 0 : i32
    %c0_i32_1 = arith.constant 0 : i32
    return %c0_i32, %c0_i32_0 : i32, i32
  }
  func.func @transform_3(%arg0: i32, %arg1: i32) -> (i32, i32) {
    %c0_i32 = arith.constant 0 : i32
    %c0_i32_0 = arith.constant 0 : i32
    %c0_i32_1 = arith.constant 0 : i32
    return %c0_i32, %c0_i32_0 : i32, i32
  }
  func.func @transform_4(%arg0: i32, %arg1: i32) -> (i32, i32) {
    %c0_i32 = arith.constant 0 : i32
    %c0_i32_0 = arith.constant 0 : i32
    %c0_i32_1 = arith.constant 0 : i32
    return %c0_i32, %c0_i32_0 : i32, i32
  }
  func.func @transform_5(%arg0: i32, %arg1: i32) -> (i32, i32) {
    %c0_i32 = arith.constant 0 : i32
    %c0_i32_0 = arith.constant 0 : i32
    %c0_i32_1 = arith.constant 0 : i32
    return %c0_i32, %c0_i32_0 : i32, i32
  }
  func.func @transform_6(%arg0: i32, %arg1: i32) -> (i32, i32) {
    %c0_i32 = arith.constant 0 : i32
    %c0_i32_0 = arith.constant 0 : i32
    %c0_i32_1 = arith.constant 0 : i32
    return %c0_i32, %c0_i32_0 : i32, i32
  }
  func.func @transform_7(%arg0: i32, %arg1: i32) -> (i32, i32) {
    %c0_i32 = arith.constant 0 : i32
    %c0_i32_0 = arith.constant 0 : i32
    %c0_i32_1 = arith.constant 0 : i32
    return %c0_i32, %c0_i32_0 : i32, i32
  }
  func.func @transform_8(%arg0: i32, %arg1: i32) -> (i32, i32) {
    %c0_i32 = arith.constant 0 : i32
    %c0_i32_0 = arith.constant 0 : i32
    %c0_i32_1 = arith.constant 0 : i32
    return %c0_i32, %c0_i32_0 : i32, i32
  }
  func.func @transform_9(%arg0: i32, %arg1: i32) -> (i32, i32) {
    %c0_i32 = arith.constant 0 : i32
    %c0_i32_0 = arith.constant 0 : i32
    return %arg1, %c0_i32 : i32, i32
  }
}

</mosaic_0001>

<bundles_post_ra>
// kernel: tpu_custom_call.1
= control target key start
LH: loop header
LB: loop body
LE: loop exit
PB: predicated region body
PF: predicated region fallthrough
CT: control target
= control target key end

     0   :  { %s4836_s0 = inlined_call_operand.hbm [shape: f32[8,24], index: 0, kind: input, shape index: {}]   ;;  %s4837_s1 = inlined_call_operand.hbm [shape: f32[8,8], index: 1, kind: input, shape index: {}]   ;;  %s4838_s2 = inlined_call_operand.vmem [shape: bf16[8,128], index: 2, kind: input, shape index: {}]   ;;  %s4839_s3 = inlined_call_operand.hbm [shape: bf16[128,128], index: 3, kind: input, shape index: {}]   ;;  %s4840_s4 = inlined_call_operand.hbm [shape: bf16[128,512], index: 4, kind: input, shape index: {}]   ;;  %s4841_s5 = inlined_call_operand.hbm [shape: bf16[24,512], index: 5, kind: input, shape index: {}]   ;;  %s4842_s6 = inlined_call_operand.hbm [shape: bf16[512,512], index: 6, kind: input, shape index: {}]   ;;  %s4843_s7 = inlined_call_operand.hbm [shape: bf16[512,256], index: 7, kind: input, shape index: {}]   ;;  %s4844_s8 = inlined_call_operand.hbm [shape: f32[10,512], index: 8, kind: input, shape index: {}]   ;;  %s4845_s9 = inlined_call_operand.hbm [shape: f32[8,256], index: 9, kind: output, shape index: {}]  }
   0x1   :  { %4852 = sst [smem:[#allocation30_spill]] %s4836_s0 }
   0x2   :  { %14 = vsyncpa [#allocation10], 0 }
   0x3   :  { %15 = vsyncpa [#allocation13], 0 }
   0x4   :  { %16 = vsyncpa [#allocation16], 0 }
   0x5   :  { %17 = vsyncpa [#allocation19], 0 }
   0x6   :  { %18 = vsyncpa [#allocation22], 0 }
   0x7   :  { %19 = vsyncpa [#allocation11], 0  ;;  %s4412_s30 = smov 0   ;;  %s4414_s10 = smov 0  }
   0x8   :  { %s4416_s11 = smov 0  }
   0x9 LB: > { %s4340_s12 = smov [#allocation12]   ;;  %s4849_s14 = sadd.s32 4294967295, %s4338_s11   ;;  %s4338_s11 = sphi %s4416_s11, %s25_s11   ;;  %s4334_s10 = sphi %s4414_s10, %s4867_s10   ;;  %s4330_s30 = sphi %s4412_s30, %s4866_s30  }
   0xa   : > { %s295_s13 = sshll.u32 %s4340_s12, 4  ;;  %p3216_p0 = scmp.ge.s32.totalorder %s4338_s11, 1  ;;  %s296_s13 = int_to_ptr.vmem [resolvable:$true] %s295_s13 }
   0xb   : > { %p267_p1 = scmp.lt.s32.totalorder %s4338_s11, 4  ;;  %p4432_p2 = scmp.eq.s32.totalorder %s4849_s14, 0 }
   0xc   : > { %s4341_s17 = smov [#allocation15]   ;;  %s4342_s20 = smov [#allocation18]  }
   0xd   : > { %s4853_s15 = scalar_select %p4432_p2, 1, 0 }
   0xe   : > { %p4436_p3 = pnand %p3216_p0, %p267_p1  ;;  %s321_s18 = sshll.u32 %s4341_s17, 4  ;;  %s4442_s18 = int_to_ptr.vmem [resolvable:$true] %s321_s18 }
   0xf   : > { %s347_s21 = sshll.u32 %s4342_s20, 4  ;;  %s4042_s24 = scalar_lea.hbm %s4837_s1, 128  ;;  %s4450_s21 = int_to_ptr.vmem [resolvable:$true] %s347_s21 }
  0x10   : > { %s4854_s16 = scalar_select %p4436_p3, 1, 0 }
  0x11   : > { %p3579_p4 = pneg %p4436_p3  ;;  %p4043_p6 = scmp.ne.s32.totalorder %s4837_s1, %s4042_s24 }
  0x12   : > { %p4049_p10 = scmp.lt.u32.totalorder %s4042_s24, %s4837_s1 }
  0x13   : > { %p4446_p5 = pnand %p4432_p2, %p3579_p4 }
  0x15   : > { %p4460_p7 = pneg %p4446_p5 }
  0x17   : > { %p4045_p8 = pnand %p4460_p7, %p4043_p6 }
  0x19   : > { %p4046_p9 = pneg %p4045_p8 }
  0x1b   : > { %p4051_p11 = pnand %p4049_p10, %p4046_p9 }
  0x1d   : > { %4054 = shalt.err (!%p4051_p11)
}
  0x1e   : > { %s4055_s12 = scalar_lea.vmem %s296_s13, 128  ;;  %p4063_p1 = scmp.lt.s32.totalorder %s296_s13, %s296_s13 }
  0x1f   : > { %p4056_p12 = scmp.ne.s32.totalorder %s296_s13, %s4055_s12  ;;  %p4064_p4 = scmp.lt.s32.totalorder %s4055_s12, %s4055_s12 }
  0x21   : > { %p4058_p13 = pnand %p4056_p12, %p4460_p7  ;;  %p4065_p2 = por %p4064_p4, %p4063_p1 }
  0x23   : > { %p4059_p0 = pneg %p4058_p13 }
  0x25   : > { %p4066_p3 = pnand %p4065_p2, %p4059_p0 }
  0x27   : > { %4069 = shalt.err (!%p4066_p3)
}
  0x28   : > { %3585 = dma.hbm_to_vmem [thread:$0]  (!%p4446_p5), %s4837_s1, 128, %s296_s13, [#allocation13]  }
  0x29   : > { %s4070_s24 = scalar_lea.hbm %s4840_s4, 4096 }
  0x2a   : > { %p4071_p6 = scmp.ne.s32.totalorder %s4840_s4, %s4070_s24  ;;  %p4077_p2 = scmp.lt.u32.totalorder %s4070_s24, %s4840_s4 }
  0x2c   : > { %p4073_p8 = pnand %p4071_p6, %p4460_p7 }
  0x2e   : > { %p4074_p9 = pneg %p4073_p8 }
  0x30   : > { %p4079_p3 = pnand %p4077_p2, %p4074_p9 }
  0x32   : > { %4082 = shalt.err (!%p4079_p3)
}
  0x33   : > { %s4083_s13 = scalar_lea.vmem %s4442_s18, 4096  ;;  %p4091_p13 = scmp.lt.s32.totalorder %s4442_s18, %s4442_s18 }
  0x34   : > { %p4084_p10 = scmp.ne.s32.totalorder %s4442_s18, %s4083_s13  ;;  %p4092_p0 = scmp.lt.s32.totalorder %s4083_s13, %s4083_s13 }
  0x36   : > { %p4086_p11 = pnand %p4084_p10, %p4460_p7  ;;  %p4093_p1 = por %p4092_p0, %p4091_p13 }
  0x38   : > { %p4087_p12 = pneg %p4086_p11 }
  0x3a   : > { %p4094_p4 = pnand %p4093_p1, %p4087_p12 }
  0x3c   : > { %4097 = shalt.err (!%p4094_p4)
}
  0x3d   : > { %s4850_s12 = smov 256   ;;  %s4851_s17 = smov 16  }
  0x3e   : > { %3591 = dma.hbm_to_vmem [thread:$0]  (!%p4446_p5), %s4840_s4, 4096, %s4442_s18, [#allocation16], %s4850_s12, %s4850_s12, %s4851_s17  }
  0x3f   : > { %s4098_s25 = scalar_lea.hbm %s4842_s6, 16384 }
  0x40   : > { %p4099_p6 = scmp.ne.s32.totalorder %s4842_s6, %s4098_s25  ;;  %p4105_p2 = scmp.lt.u32.totalorder %s4098_s25, %s4842_s6 }
  0x42   : > { %p4101_p8 = pnand %p4099_p6, %p4460_p7 }
  0x44   : > { %p4102_p9 = pneg %p4101_p8 }
  0x46   : > { %p4107_p3 = pnand %p4105_p2, %p4102_p9 }
  0x48   : > { %4110 = shalt.err (!%p4107_p3)
}
  0x49   : > { %s4111_s18 = scalar_lea.vmem %s4450_s21, 16384  ;;  %p4119_p13 = scmp.lt.s32.totalorder %s4450_s21, %s4450_s21 }
  0x4a   : > { %p4112_p10 = scmp.ne.s32.totalorder %s4450_s21, %s4111_s18  ;;  %p4120_p0 = scmp.lt.s32.totalorder %s4111_s18, %s4111_s18 }
  0x4c   : > { %p4114_p11 = pnand %p4112_p10, %p4460_p7  ;;  %p4121_p1 = por %p4120_p0, %p4119_p13 }
  0x4e   : > { %p4115_p12 = pneg %p4114_p11 }
  0x50   : > { %p4122_p4 = pnand %p4121_p1, %p4115_p12 }
  0x52   : > { %4125 = shalt.err (!%p4122_p4)
}
  0x53   : > { %3597 = dma.hbm_to_vmem [thread:$0]  (!%p4446_p5), %s4842_s6, 16384, %s4450_s21, [#allocation19], %s4850_s12, %s4850_s12, %s4851_s17  }
  0x54   : > { %s37_s23 = sadd.s32 1, %s4334_s10  ;;  %s4345_s24 = smov [#allocation9]  }
  0x55   : > { %p39_p6 = scmp.ge.s32.totalorder %s37_s23, 3  ;;  %s282_s25 = sshll.u32 %s4345_s24, 4  ;;  %s283_s25 = int_to_ptr.vmem [resolvable:$true] %s282_s25 }
  0x56   : > { %s4857_s0 = sld [smem:[#allocation30_spill]] }
  0x57   : > { %s4869_s23 = smov (%p39_p6, %s37_s23), 0 }
  0x5c   : > { %s4126_s29 = scalar_lea.hbm %s4857_s0, 128 }
  0x5d   : > { %p4127_p8 = scmp.ne.s32.totalorder %s4857_s0, %s4126_s29  ;;  %p4133_p3 = scmp.lt.u32.totalorder %s4126_s29, %s4857_s0 }
  0x5f   : > { %p4129_p9 = pnand %p4127_p8, %p4460_p7 }
  0x61   : > { %p4130_p2 = pneg %p4129_p9 }
  0x63   : > { %p4135_p10 = pnand %p4133_p3, %p4130_p2 }
  0x65   : > { %4138 = shalt.err (!%p4135_p10)
}
  0x66   : > { %s4139_s22 = scalar_lea.vmem %s283_s25, 128  ;;  %p4147_p0 = scmp.lt.s32.totalorder %s283_s25, %s283_s25 }
  0x67   : > { %p4140_p11 = scmp.ne.s32.totalorder %s283_s25, %s4139_s22  ;;  %p4148_p1 = scmp.lt.s32.totalorder %s4139_s22, %s4139_s22 }
  0x69   : > { %p4142_p12 = pnand %p4140_p11, %p4460_p7  ;;  %p4149_p4 = por %p4148_p1, %p4147_p0 }
  0x6b   : > { %p4143_p13 = pneg %p4142_p12 }
  0x6d   : > { %p4150_p6 = pnand %p4149_p4, %p4143_p13 }
  0x6f   : > { %4153 = shalt.err (!%p4150_p6)
}
  0x70   : > { %3582 = dma.hbm_to_vmem [thread:$0]  (!%p4446_p5), %s4857_s0, 128, %s283_s25, [#allocation10]  }
  0x71   : > { %s4346_s28 = smov [#allocation14]   ;;  %s4154_s20 = scalar_lea.hbm %s4839_s3, 1024 }
  0x72   : > { %s308_s29 = sshll.u32 %s4346_s28, 4  ;;  %p4155_p8 = scmp.ne.s32.totalorder %s4839_s3, %s4154_s20  ;;  %s309_s29 = int_to_ptr.vmem [resolvable:$true] %s308_s29 }
  0x73   : > { %p4161_p3 = scmp.lt.u32.totalorder %s4154_s20, %s4839_s3 }
  0x74   : > { %p4157_p9 = pnand %p4155_p8, %p4460_p7 }
  0x76   : > { %p4158_p2 = pneg %p4157_p9 }
  0x78   : > { %p4163_p10 = pnand %p4161_p3, %p4158_p2 }
  0x7a   : > { %4166 = shalt.err (!%p4163_p10)
}
  0x7b   : > { %s4167_s25 = scalar_lea.vmem %s309_s29, 1024  ;;  %p4175_p0 = scmp.lt.s32.totalorder %s309_s29, %s309_s29 }
  0x7c   : > { %p4168_p11 = scmp.ne.s32.totalorder %s309_s29, %s4167_s25  ;;  %p4176_p1 = scmp.lt.s32.totalorder %s4167_s25, %s4167_s25 }
  0x7e   : > { %p4170_p12 = pnand %p4168_p11, %p4460_p7  ;;  %p4177_p4 = por %p4176_p1, %p4175_p0 }
  0x80   : > { %p4171_p13 = pneg %p4170_p12 }
  0x82   : > { %p4178_p6 = pnand %p4177_p4, %p4171_p13 }
  0x84   : > { %4181 = shalt.err (!%p4178_p6)
}
  0x85   : > { %s4347_s14 = smov 64   ;;  %s4348_s24 = smov 4  }
  0x86   : > { %3588 = dma.hbm_to_vmem [thread:$0]  (!%p4446_p5), %s4839_s3, 1024, %s309_s29, [#allocation13], %s4347_s14, %s4347_s14, %s4348_s24  }
  0x87   : > { %s4349_s28 = smov [#allocation17]   ;;  %s4350_s18 = smov [#allocation20]  }
  0x88   : > { %s334_s13 = sshll.u32 %s4349_s28, 4  ;;  %s360_s20 = sshll.u32 %s4350_s18, 4  ;;  %s335_s13 = int_to_ptr.vmem [resolvable:$true] %s334_s13  ;;  %s4567_s20 = int_to_ptr.vmem [resolvable:$true] %s360_s20 }
  0x89   : > { %s4182_s25 = scalar_lea.hbm %s4841_s5, 768 }
  0x8a   : > { %p4183_p8 = scmp.ne.s32.totalorder %s4841_s5, %s4182_s25  ;;  %p4189_p3 = scmp.lt.u32.totalorder %s4182_s25, %s4841_s5 }
  0x8c   : > { %p4185_p9 = pnand %p4183_p8, %p4460_p7 }
  0x8e   : > { %p4186_p2 = pneg %p4185_p9 }
  0x90   : > { %p4191_p10 = pnand %p4189_p3, %p4186_p2 }
  0x92   : > { %4194 = shalt.err (!%p4191_p10)
}
  0x93   : > { %s4195_s14 = scalar_lea.vmem %s335_s13, 768  ;;  %p4203_p0 = scmp.lt.s32.totalorder %s335_s13, %s335_s13 }
  0x94   : > { %p4196_p11 = scmp.ne.s32.totalorder %s335_s13, %s4195_s14  ;;  %p4204_p1 = scmp.lt.s32.totalorder %s4195_s14, %s4195_s14 }
  0x96   : > { %p4198_p12 = pnand %p4196_p11, %p4460_p7  ;;  %p4205_p4 = por %p4204_p1, %p4203_p0 }
  0x98   : > { %p4199_p13 = pneg %p4198_p12 }
  0x9a   : > { %p4206_p6 = pnand %p4205_p4, %p4199_p13 }
  0x9c   : > { %4209 = shalt.err (!%p4206_p6)
}
  0x9d   : > { %s4858_s0 = smov 16   ;;  %s4859_s17 = smov 256  }
  0x9e   : > { %3594 = dma.hbm_to_vmem [thread:$0]  (!%p4446_p5), %s4841_s5, 768, %s335_s13, [#allocation16], %s4859_s17, %s4859_s17, %s4858_s0  }
  0x9f   : > { %s4210_s21 = scalar_lea.hbm %s4843_s7, 8192 }
  0xa0   : > { %p4211_p8 = scmp.ne.s32.totalorder %s4843_s7, %s4210_s21  ;;  %p4217_p3 = scmp.lt.u32.totalorder %s4210_s21, %s4843_s7 }
  0xa2   : > { %p4213_p9 = pnand %p4211_p8, %p4460_p7 }
  0xa4   : > { %p4214_p2 = pneg %p4213_p9 }
  0xa6   : > { %p4219_p10 = pnand %p4217_p3, %p4214_p2 }
  0xa8   : > { %4222 = shalt.err (!%p4219_p10)
}
  0xa9   : > { %s4223_s13 = scalar_lea.vmem %s4567_s20, 8192  ;;  %p4231_p0 = scmp.lt.s32.totalorder %s4567_s20, %s4567_s20 }
  0xaa   : > { %p4224_p11 = scmp.ne.s32.totalorder %s4567_s20, %s4223_s13  ;;  %p4232_p1 = scmp.lt.s32.totalorder %s4223_s13, %s4223_s13 }
  0xac   : > { %p4226_p12 = pnand %p4224_p11, %p4460_p7  ;;  %p4233_p4 = por %p4232_p1, %p4231_p0 }
  0xae   : > { %p4227_p13 = pneg %p4226_p12 }
  0xb0   : > { %p4234_p6 = pnand %p4233_p4, %p4227_p13 }
  0xb2   : > { %4237 = shalt.err (!%p4234_p6)
}
  0xb3   : > { %s4351_s14 = smov 128   ;;  %s4352_s0 = smov 8  }
  0xb4   : > { %3600 = dma.hbm_to_vmem [thread:$0]  (!%p4446_p5), %s4843_s7, 8192, %s4567_s20, [#allocation19], %s4351_s14, %s4351_s14, %s4352_s0  }
  0xb5   : > { %s4353_s26 = smov [#allocation21]   ;;  %s4238_s22 = scalar_lea.hbm %s4844_s8, 1024 }
  0xb6   : > { %s373_s28 = sshll.u32 %s4353_s26, 4  ;;  %p4239_p8 = scmp.ne.s32.totalorder %s4844_s8, %s4238_s22  ;;  %s374_s28 = int_to_ptr.vmem [resolvable:$true] %s373_s28 }
  0xb7   : > { %p4245_p3 = scmp.lt.u32.totalorder %s4238_s22, %s4844_s8 }
  0xb8   : > { %p4241_p9 = pnand %p4239_p8, %p4460_p7 }
  0xba   : > { %p4242_p2 = pneg %p4241_p9 }
  0xbc   : > { %p4247_p10 = pnand %p4245_p3, %p4242_p2 }
  0xbe   : > { %4250 = shalt.err (!%p4247_p10)
}
  0xbf   : > { %s4251_s20 = scalar_lea.vmem %s374_s28, 1024  ;;  %p4259_p0 = scmp.lt.s32.totalorder %s374_s28, %s374_s28 }
  0xc0   : > { %p4252_p11 = scmp.ne.s32.totalorder %s374_s28, %s4251_s20  ;;  %p4260_p1 = scmp.lt.s32.totalorder %s4251_s20, %s4251_s20 }
  0xc2   : > { %p4254_p12 = pnand %p4252_p11, %p4460_p7  ;;  %p4261_p4 = por %p4260_p1, %p4259_p0 }
  0xc4   : > { %p4255_p13 = pneg %p4254_p12 }
  0xc6   : > { %p4262_p6 = pnand %p4261_p4, %p4255_p13 }
  0xc8   : > { %4265 = shalt.err (!%p4262_p6)
}
  0xc9   : > { %s4354_s14 = smov 512   ;;  %s4355_s0 = smov 32  }
  0xca   : > { %3603 = dma.hbm_to_vmem [thread:$0]  (!%p4446_p5), %s4844_s8, 1024, %s374_s28, [#allocation22], %s4354_s14, %s4354_s14, %s4355_s0  }
  0xcb   : > { %p4860_p8 = scmp.ne.s32.totalorder %s4854_s16, 0 }
  0xcc   : > { %p4861_p9 = scmp.ne.s32.totalorder (!%p4860_p8), %s4853_s15, 0 }
  0xcd   : > { %389 = sbr.rel (%p4860_p8) target bundleno = 1605 (0x645), region = 56 }
  0xd4   : > { %4305 = dma.done.wait (%p4861_p9), [#allocation10], 128  }
  0xd5   : > { %4307 = vsyncadd (%p4861_p9), [#allocation10], 4294967168 }
  0xd6   : > { %4309 = dma.done.wait (%p4861_p9), [#allocation13], 1152  }
  0xd7   : > { %4311 = vsyncadd (%p4861_p9), [#allocation13], 4294966144 }
  0xd8   : > { %4313 = dma.done.wait (%p4861_p9), [#allocation16], 4864  }
  0xd9   : > { %4315 = vsyncadd (%p4861_p9), [#allocation16], 4294962432 }
  0xda   : > { %4317 = dma.done.wait (%p4861_p9), [#allocation19], 24576  }
  0xdb   : > { %4319 = vsyncadd (%p4861_p9), [#allocation19], 4294942720 }
  0xdc   : > { %4321 = dma.done.wait (%p4861_p9), [#allocation22], 1024  }
  0xdd   : > { %4323 = vsyncadd (%p4861_p9), [#allocation22], 4294966272  ;;  %p3234_p5 = scmp.ne.s32.totalorder %s4330_s30, 0 }
  0xde   : > { %v462_v0 = vld [vmem:[%s4838_s2] sm:$0xf] (!%p3234_p5)  ;;  %vm468_vm0 = vcmask (!%p3234_p5), 1043456   ;;  %v460_v1 = vld [vmem:[#allocation12] sm:$0xff] (!%p3234_p5)  ;;  %v4356_v2 = vmov (!%p3234_p5), 0.0   ;;  %vm4357_vm1 = vmmov (!%p3234_p5), 0   ;;  %v452_v56 = vlaneseq (!%p3234_p5) }
  0xdf   : > { %447 = sbr.rel (%p3234_p5) target bundleno = 926 (0x39e), region = 92  ;;  %3501 = vmatprep.subr.bf16.mxu0 (!%p3234_p5), %v4356_v2  ;;  %v470_v3 = vsel (!%p3234_p5), %vm468_vm0, %v462_v0, 0  ;;  %3503 = vmatprep.mubr.msk.bf16.mxu0 (!%p3234_p5), %vm4357_vm1, %v4356_v2  ;;  %v461_v4 = vpack.c.bf16 (!%p3234_p5), %v460_v1, %v460_v1  ;;  %vm464_vm2 = vcmask (!%p3234_p5), 64512   ;;  %v3668_v5 = vld [vmem:[#allocation14] sm:$0xff] (!%p3234_p5)   ;;  %v3669_v6 = vld [vmem:[#allocation14 + $0x8] sm:$0xff] (!%p3234_p5)   ;;  %v3670_v7 = vld [vmem:[#allocation14 + $0x10] sm:$0xff] (!%p3234_p5)  }
  0xe0   : > { %3502 = vmatpush3.bf16.msra.mxu0 (!%p3234_p5), %v470_v3  ;;  %3507 = vmatprep.subr.bf16.mxu1 (!%p3234_p5), %v4356_v2  ;;  %v3671_v8 = vld [vmem:[#allocation14 + $0x18] sm:$0xff] (!%p3234_p5)   ;;  %v3672_v9 = vld [vmem:[#allocation14 + $0x20] sm:$0xff] (!%p3234_p5)   ;;  %v3673_v10 = vld [vmem:[#allocation14 + $0x28] sm:$0xff] (!%p3234_p5)   ;;  %v4358_v55 = vmov (!%p3234_p5), 0   ;;  %vm4669_vm4 = vcmp.lt.s32.totalorder (!%p3234_p5), %v452_v56, 512  ;;  %vm1014_vm6 = vcmask (!%p3234_p5), 195584  }
  0xe1   : > { %3523 = vmatprep.mubr.msk.bf16.mxu1 (!%p3234_p5), %vm4357_vm1, %v4356_v2  ;;  %3508 = vmatpush3.bf16.msra.mxu1 (!%p3234_p5), %v3668_v5  ;;  %v3674_v11 = vld [vmem:[#allocation14 + $0x30] sm:$0xff] (!%p3234_p5)   ;;  %v3675_v12 = vld [vmem:[#allocation14 + $0x38] sm:$0xff] (!%p3234_p5)   ;;  %456 = vst.msk [vmem:[#allocation5] sm:$0xf] (!%p3234_p5), %vm4669_vm4, %v4356_v2  ;;  %457 = vst.msk [vmem:[#allocation6] sm:$0xf] (!%p3234_p5), %vm4669_vm4, %v4356_v2 }
  0xe2   : > { %3509 = vmatprep.subr.bf16.mxu1 (!%p3234_p5), %v4356_v2  ;;  %v3676_v13 = vld [vmem:[#allocation15] ss:$16 sps:$4 sm:$0xff] (!%p3234_p5)   ;;  %v3678_v14 = vld [vmem:[#allocation15 + $0x4] ss:$16 sps:$4 sm:$0xff] (!%p3234_p5)   ;;  %v3681_v15 = vld [vmem:[#allocation15 + $0xc] ss:$16 sps:$4 sm:$0xff] (!%p3234_p5)  }
  0xe3   : > { %3504 = vmatmul.mubr.msk.bf16.vlgmr.msra.gmra.mrb[0].mxu0 (!%p3234_p5), %vm464_vm2, %v461_v4  ;;  %v3684_v16 = vld [vmem:[#allocation15 + $0x24] ss:$16 sps:$4 sm:$0xff] (!%p3234_p5)   ;;  %840 = vmatprep.subr.bf16.mxu0 (!%p3234_p5), %v3678_v14  ;;  %v3682_v17 = vld [vmem:[#allocation15 + $0x20] ss:$16 sps:$4 sm:$0xff] (!%p3234_p5)   ;;  %v3679_v36 = vld [vmem:[#allocation15 + $0x8] ss:$16 sps:$4 sm:$0xff] (!%p3234_p5)  }
  0xe4   : > { %841 = vmatpush1.bf16.msra.mxu0 (!%p3234_p5), %v3676_v13  ;;  %v3690_v18 = vld [vmem:[#allocation15 + $0x44] ss:$16 sps:$4 sm:$0xff] (!%p3234_p5)   ;;  %v3688_v19 = vld [vmem:[#allocation15 + $0x40] ss:$16 sps:$4 sm:$0xff] (!%p3234_p5)   ;;  %v3687_v38 = vld [vmem:[#allocation15 + $0x2c] ss:$16 sps:$4 sm:$0xff] (!%p3234_p5)   ;;  %872 = vmatprep.mubr.bf16.mxu0 (!%p3234_p5), %v4358_v55 }
  0xe5   : > { %3510 = vmatpush3.bf16.msra.mxu1 (!%p3234_p5), %v3669_v6  ;;  %842 = vmatprep.subr.bf16.mxu0 (!%p3234_p5), %v3684_v16  ;;  %v3696_v20 = vld [vmem:[#allocation15 + $0x64] ss:$16 sps:$4 sm:$0xff] (!%p3234_p5)   ;;  %v3694_v21 = vld [vmem:[#allocation15 + $0x60] ss:$16 sps:$4 sm:$0xff] (!%p3234_p5)   ;;  %v3685_v39 = vld [vmem:[#allocation15 + $0x28] ss:$16 sps:$4 sm:$0xff] (!%p3234_p5)  }
  0xe6   : > { %3511 = vmatprep.subr.bf16.mxu1 %v4356_v2  ;;  %v3702_v22 = vld [vmem:[#allocation15 + $0x84] ss:$16 sps:$4 sm:$0xff]   ;;  %v3700_v23 = vld [vmem:[#allocation15 + $0x80] ss:$16 sps:$4 sm:$0xff]   ;;  %v3693_v40 = vld [vmem:[#allocation15 + $0x4c] ss:$16 sps:$4 sm:$0xff]  }
  0xe7   : > { %v3708_v24 = vld [vmem:[#allocation15 + $0xa4] ss:$16 sps:$4 sm:$0xff]   ;;  %v3706_v25 = vld [vmem:[#allocation15 + $0xa0] ss:$16 sps:$4 sm:$0xff]   ;;  %v3691_v41 = vld [vmem:[#allocation15 + $0x48] ss:$16 sps:$4 sm:$0xff]  }
  0xe8   : > { %843 = vmatpush1.bf16.msra.mxu0 %v3682_v17  ;;  %v3714_v26 = vld [vmem:[#allocation15 + $0xc4] ss:$16 sps:$4 sm:$0xff]   ;;  %v3712_v27 = vld [vmem:[#allocation15 + $0xc0] ss:$16 sps:$4 sm:$0xff]   ;;  %v3699_v42 = vld [vmem:[#allocation15 + $0x6c] ss:$16 sps:$4 sm:$0xff]  }
  0xe9   : > { %3512 = vmatpush3.bf16.msra.mxu1 %v3670_v7  ;;  %844 = vmatprep.subr.bf16.mxu0 %v3690_v18  ;;  %v463_v28 = vld [vmem:[#allocation21] ss:$0 sm:$0xff]  ;;  %v3697_v43 = vld [vmem:[#allocation15 + $0x68] ss:$16 sps:$4 sm:$0xff]   ;;  %v3705_v44 = vld [vmem:[#allocation15 + $0x8c] ss:$16 sps:$4 sm:$0xff]  }
  0xea   : > { %3513 = vmatprep.subr.bf16.mxu1 %v4356_v2  ;;  %v3703_v45 = vld [vmem:[#allocation15 + $0x88] ss:$16 sps:$4 sm:$0xff]   ;;  %v3711_v46 = vld [vmem:[#allocation15 + $0xac] ss:$16 sps:$4 sm:$0xff]   ;;  %v3720_v50 = vld [vmem:[#allocation15 + $0xe4] ss:$16 sps:$4 sm:$0xff]  }
  0xeb   : > { %v3709_v47 = vld [vmem:[#allocation15 + $0xa8] ss:$16 sps:$4 sm:$0xff]   ;;  %v3717_v48 = vld [vmem:[#allocation15 + $0xcc] ss:$16 sps:$4 sm:$0xff]   ;;  %v3718_v52 = vld [vmem:[#allocation15 + $0xe0] ss:$16 sps:$4 sm:$0xff]  }
  0xec   : > { %845 = vmatpush1.bf16.msra.mxu0 %v3688_v19  ;;  %v3715_v49 = vld [vmem:[#allocation15 + $0xc8] ss:$16 sps:$4 sm:$0xff]   ;;  %v3723_v51 = vld [vmem:[#allocation15 + $0xec] ss:$16 sps:$4 sm:$0xff]   ;;  %v3726_v54 = vld [vmem:[#allocation17 + $0x4] ss:$16 sps:$4 sm:$0xff]  }
  0xed   : > { %3514 = vmatpush3.bf16.msra.mxu1 %v3671_v8  ;;  %846 = vmatprep.subr.bf16.mxu0 %v3696_v20  ;;  %v3721_v53 = vld [vmem:[#allocation15 + $0xe8] ss:$16 sps:$4 sm:$0xff]   ;;  %458 = vst.msk [vmem:[#allocation7] sm:$0xf] %vm4669_vm4, %v4356_v2  ;;  %459 = vst.msk [vmem:[#allocation8] sm:$0xf] %vm4669_vm4, %v4356_v2 }
  0xee   : > { %3515 = vmatprep.subr.bf16.mxu1 %v4356_v2  ;;  %v532_v58 = vld [vmem:[#allocation21 + $0x1] ss:$0 sm:$0xff]  ;;  %v959_v1 = vld [vmem:[#allocation17 + $0x20] sm:$0xff]  ;;  %v661_v16 = vshrl.u32 %v452_v56, 7 }
  0xef   : > { %v3724_v4 = vld [vmem:[#allocation17] ss:$16 sps:$4 sm:$0xff]   ;;  %v3285_v6 = vcombine.high %v959_v1, %v959_v1  ;;  %v3284_v7 = vcombine.low %v959_v1, %v959_v1 }
  0xf0   : > { %847 = vmatpush1.bf16.msra.mxu0 %v3694_v21  ;;  %v953_v8 = vld [vmem:[#allocation9] sm:$0xff]  ;;  %v662_v17 = vsub.s32 0, %v661_v16  ;;  %v670_v18 = vsub.s32 2, %v661_v16  ;;  %v666_v20 = vsub.s32 1, %v661_v16  ;;  %v674_v21 = vsub.s32 3, %v661_v16 }
  0xf1   : > { %3516 = vmatpush3.bf16.msra.mxu1 %v3672_v9  ;;  %848 = vmatprep.subr.bf16.mxu0 %v3702_v22  ;;  %v3731_v9 = vld [vmem:[#allocation17 + $0xc] ss:$16 sps:$4 sm:$0xff]   ;;  %v658_v19 = vld [vmem:[#allocation21 + $0x2] ss:$8 sm:$0xf] }
  0xf2   : > { %3517 = vmatprep.subr.bf16.mxu1 %v4356_v2  ;;  %v663_v22 = vrot.slane %v658_v19, %v662_v17 }
  0xf4   : > { %849 = vmatpush1.bf16.msra.mxu0 %v3700_v23  ;;  %v671_v23 = vrot.slane %v658_v19, %v670_v18 }
  0xf5   : > { %3518 = vmatpush3.bf16.msra.mxu1 %v3673_v10  ;;  %850 = vmatprep.subr.bf16.mxu0 %v3708_v24  ;;  %v960_v10 = vld [vmem:[#allocation17 + $0x28] sm:$0xff]  ;;  %v667_v24 = vrot.slane %v658_v19, %v666_v20 }
  0xf6   : > { %3519 = vmatprep.subr.bf16.mxu1 %v4356_v2  ;;  %v3287_v13 = vcombine.high %v960_v10, %v960_v10  ;;  %v3286_v14 = vcombine.low %v960_v10, %v960_v10 }
  0xf8   : > { %851 = vmatpush1.bf16.msra.mxu0 %v3706_v25  ;;  %v675_v25 = vrot.slane %v658_v19, %v674_v21 }
  0xf9   : > { %3520 = vmatpush3.bf16.msra.mxu1 %v3674_v11  ;;  %852 = vmatprep.subr.bf16.mxu0 %v3714_v26  ;;  %v954_v11 = vpack.c.bf16 %v953_v8, %v953_v8 }
  0xfa   : > { %3521 = vmatprep.subr.bf16.mxu1 %v4356_v2  ;;  %v1019_v2 = vsel %vm468_vm0, %v3284_v7, 0 }
  0xfc   : > { %853 = vmatpush1.bf16.msra.mxu0 %v3712_v27 }
  0xfd   : > { %3522 = vmatpush3.bf16.msra.mxu1 %v3675_v12  ;;  %854 = vmatprep.subr.bf16.mxu0 %v3720_v50  ;;  %v3729_v12 = vld [vmem:[#allocation17 + $0x8] ss:$16 sps:$4 sm:$0xff]  }
  0xfe   : > { %881 = vmatprep.subr.bf16.mxu1 %v3681_v15  ;;  %v1025_v15 = vsel %vm468_vm0, %v3286_v14, 0 }
 0x100   : > { %855 = vmatpush1.bf16.msra.mxu0 %v3718_v52 }
 0x101   : > { %1030 = vmatprep.subr.bf16.mxu0 %v3726_v54 }
 0x1b6   : > { %v506_v29 = vpop.f32.mrb[0].mxu0 }
 0x1b7   : > { %v507_v30 = vadd.f32 %v506_v29, %v463_v28  ;;  %v3505_v31 = vpop.f32.mrb[1].mxu0 }
 0x1b8   : > { %v509_v32 = vpop.f32.mrb[2].mxu0 }
 0x1b9   : > { %vm512_vm3 = vcmp.gt.f32.partialorder %v507_v30, 0.0  ;;  %v513_v33 = vmul.f32 0.2, %v507_v30  ;;  %v3506_v34 = vpop.f32.mrb[3].mxu0 }
 0x1bb   : > { %v514_v35 = vsel %vm512_vm3, %v507_v30, %v513_v33 }
 0x1bc   : > { %v515_v37 = vpack.c.bf16 %v514_v35, %v514_v35 }
 0x1be   : > { %3524 = vmatmul.mubr.bf16.vlgmr.msra.gmra.mrb[0].mxu1 %v515_v37 }
 0x1bf   : > { %882 = vmatpush1.bf16.msra.mxu1 %v3679_v36  ;;  %913 = vmatprep.mubr.bf16.mxu1 %v4358_v55  ;;  %v962_v36 = vld [vmem:[#allocation21 + $0x3] ss:$8 sm:$0xf] }
 0x1c0   : > { %883 = vmatprep.subr.bf16.mxu1 %v3687_v38 }
 0x1c3   : > { %884 = vmatpush1.bf16.msra.mxu1 %v3685_v39 }
 0x1c4   : > { %885 = vmatprep.subr.bf16.mxu1 %v3693_v40 }
 0x1c7   : > { %886 = vmatpush1.bf16.msra.mxu1 %v3691_v41 }
 0x1c8   : > { %887 = vmatprep.subr.bf16.mxu1 %v3699_v42 }
 0x1cb   : > { %888 = vmatpush1.bf16.msra.mxu1 %v3697_v43  ;;  %v967_v43 = vrot.slane %v962_v36, %v662_v17 }
 0x1cc   : > { %889 = vmatprep.subr.bf16.mxu1 %v3705_v44  ;;  %v971_v44 = vrot.slane %v962_v36, %v666_v20 }
 0x1cf   : > { %890 = vmatpush1.bf16.msra.mxu1 %v3703_v45  ;;  %v4359_v45 = vmov 1966171168  }
 0x1d0   : > { %891 = vmatprep.subr.bf16.mxu1 %v3711_v46  ;;  %v1150_v46 = vunpack.c.l.s4 %v4359_v45 }
 0x1d3   : > { %892 = vmatpush1.bf16.msra.mxu1 %v3709_v47 }
 0x1d4   : > { %893 = vmatprep.subr.bf16.mxu1 %v3717_v48 }
 0x1d7   : > { %894 = vmatpush1.bf16.msra.mxu1 %v3715_v49 }
 0x1d8   : > { %895 = vmatprep.subr.bf16.mxu1 %v3723_v51 }
 0x1db   : > { %896 = vmatpush1.bf16.msra.mxu1 %v3721_v53 }
 0x291   : > { %v615_v59 = vpop.f32.mrb[0].mxu1 }
 0x292   : > { %v616_v60 = vadd.f32 %v615_v59, %v532_v58  ;;  %v3525_v61 = vpop.f32.mrb[1].mxu1 }
 0x293   : > { %v618_v62 = vpop.f32.mrb[2].mxu1  ;;  %v975_v61 = vrot.slane %v962_v36, %v670_v18 }
 0x294   : > { %vm621_vm5 = vcmp.gt.f32.partialorder %v616_v60, 0.0  ;;  %v622_v63 = vmul.f32 0.2, %v616_v60  ;;  %v3526_v0 = vpop.f32.mrb[3].mxu1 }
 0x296   : > { %v623_v3 = vsel %vm621_vm5, %v616_v60, %v622_v63 }
 0x297   : > { %v624_v5 = vpack.c.bf16 %v623_v3, %v623_v3 }
 0x299   : > { %873 = vmatmul.mubr.bf16.vlgmr.msra.gmra.mrb[4].mxu0 %v624_v5  ;;  %914 = vmatmul.mubr.bf16.vlgmr.msra.gmra.mrb[4].mxu1 %v624_v5 }
 0x29a   : > { %1031 = vmatpush1.bf16.msra.mxu0 %v3724_v4  ;;  %1062 = vmatprep.mubr.bf16.mxu0 %v4358_v55  ;;  %v979_v4 = vrot.slane %v962_v36, %v674_v21 }
 0x29b   : > { %3288 = vmatprep.subr.msk.bf16.mxu0 %vm468_vm0, %v3285_v6 }
 0x29e   : > { %1033 = vmatpush1.bf16.msra.mxu0 %v1019_v2 }
 0x29f   : > { %1071 = vmatprep.subr.bf16.mxu0 %v3731_v9 }
 0x2a1   : > { %3289 = vmatmul.mubr.msk.bf16.vlgmr.msra.gmra.mrb[8].mxu0 %vm1014_vm6, %v954_v11 }
 0x2a2   : > { %1072 = vmatpush1.bf16.msra.mxu0 %v3729_v12  ;;  %1103 = vmatprep.mubr.bf16.mxu0 %v4358_v55  ;;  %v1151_v55 = vunpack.c.0.s8 %v1150_v46 }
 0x2a3   : > { %3290 = vmatprep.subr.msk.bf16.mxu0 %vm468_vm0, %v3287_v13 }
 0x2a4   : > { %v4689_v7 = vsub.s32 %v1151_v55, %v661_v16 }
 0x2a6   : > { %1074 = vmatpush1.bf16.msra.mxu0 %v1025_v15 }
 0x2a9   : > { %3291 = vmatmul.mubr.msk.bf16.vlgmr.msra.gmra.mrb[12].mxu0 %vm1014_vm6, %v954_v11 }
 0x36c   : > { %v874_v26 = vpop.f32.mrb[4].mxu0  ;;  %v915_v27 = vpop.f32.mrb[4].mxu1 }
 0x36d   : > { %v875_v28 = vadd.f32 %v874_v26, %v663_v22  ;;  %v916_v29 = vadd.f32 %v915_v27, %v671_v23  ;;  %v876_v30 = vpop.f32.mrb[5].mxu0  ;;  %v917_v31 = vpop.f32.mrb[5].mxu1 }
 0x36e   : > { %v877_v32 = vadd.f32 %v876_v30, %v667_v24  ;;  %v918_v33 = vadd.f32 %v917_v31, %v675_v25  ;;  %v878_v34 = vpop.f32.mrb[6].mxu0  ;;  %v919_v35 = vpop.f32.mrb[6].mxu1 }
 0x36f   : > { %v3276_v37 = vmul.f32 -1.442695, %v875_v28  ;;  %v3278_v38 = vmul.f32 -1.442695, %v916_v29  ;;  %v879_v39 = vpop.f32.mrb[7].mxu0  ;;  %v920_v40 = vpop.f32.mrb[7].mxu1 }
 0x370   : > { %v3277_v41 = vmul.f32 -1.442695, %v877_v32  ;;  %v3279_v42 = vmul.f32 -1.442695, %v918_v33 }
 0x371   : > { %3734 = vpow2.f32 %v3276_v37 }
 0x372   : > { %3736 = vpow2.f32 %v3278_v38 }
 0x373   : > { %3738 = vpow2.f32 %v3277_v41 }
 0x374   : > { %3740 = vpow2.f32 %v3279_v42  ;;  %v1064_v47 = vpop.f32.mrb[8].mxu0 }
 0x375   : > { %v1065_v48 = vadd.f32 %v1064_v47, %v967_v43  ;;  %v1066_v49 = vpop.f32.mrb[9].mxu0 }
 0x376   : > { %v1067_v50 = vadd.f32 %v1066_v49, %v971_v44  ;;  %v1068_v51 = vpop.f32.mrb[10].mxu0 }
 0x377   : > { %1114 = vst [vmem:[#allocation2] sm:$0xff] %v1065_v48  ;;  %v1119_v52 = vrot.slane %v1065_v48, 4  ;;  %v1179_v53 = vmul.f32 %v1065_v48, %v1065_v48  ;;  %v1069_v54 = vpop.f32.mrb[11].mxu0 }
 0x378   : > { %1115 = vst [vmem:[#allocation2 + $0x8] sm:$0xff] %v1067_v50  ;;  %v1125_v56 = vrot.slane %v1067_v50, 4  ;;  %v1180_v58 = vmul.f32 %v1067_v50, %v1067_v50 }
 0x379   : > { %v1120_v59 = vadd.f32 %v1119_v52, %v1065_v48  ;;  %v1183_v60 = vrot.slane %v1179_v53, 4 }
 0x37a   : > { %v1126_v62 = vadd.f32 %v1125_v56, %v1067_v50  ;;  %v1189_v63 = vrot.slane %v1180_v58, 4 }
 0x37b   : > { %v3735_v0 = vpop.eup %3734  ;;  %v1121_v1 = vrot.slane %v1120_v59, 2  ;;  %v1184_v3 = vadd.f32 %v1183_v60, %v1179_v53 }
 0x37c   : > { %v3737_v5 = vpop.eup %3736  ;;  %v934_v6 = vadd.f32 1.0, %v3735_v0  ;;  %v1127_v8 = vrot.slane %v1126_v62, 2  ;;  %v1190_v2 = vadd.f32 %v1189_v63, %v1180_v58  ;;  %v1105_v9 = vpop.f32.mrb[12].mxu0 }
 0x37d   : > { %v3739_v10 = vpop.eup %3738  ;;  %v936_v11 = vadd.f32 1.0, %v3737_v5  ;;  %v1122_v12 = vadd.f32 %v1121_v1, %v1120_v59  ;;  %v1185_v13 = vrot.slane %v1184_v3, 2  ;;  %v1106_v14 = vadd.f32 %v1105_v9, %v975_v61  ;;  %v1107_v15 = vpop.f32.mrb[13].mxu0 }
 0x37e   : > { %v3741_v17 = vpop.eup %3740  ;;  %3742 = vrcp.f32 %v934_v6  ;;  %v935_v18 = vadd.f32 1.0, %v3739_v10  ;;  %v1128_v19 = vadd.f32 %v1127_v8, %v1126_v62  ;;  %v1191_v20 = vrot.slane %v1190_v2, 2  ;;  %v1109_v22 = vpop.f32.mrb[14].mxu0  ;;  %v1118_v10 = vld [vmem:[#allocation5] sm:$0xf] }
 0x37f   : > { %3744 = vrcp.f32 %v936_v11  ;;  %v937_v21 = vadd.f32 1.0, %v3741_v17  ;;  %v1123_v23 = vrot.slane %v1122_v12, 1  ;;  %v1186_v16 = vadd.f32 %v1185_v13, %v1184_v3  ;;  %1116 = vst [vmem:[#allocation2 + $0x10] sm:$0xff] %v1106_v14  ;;  %v1110_v24 = vpop.f32.mrb[15].mxu0 }
 0x380   : > { %3746 = vrcp.f32 %v935_v18  ;;  %v1129_v25 = vrot.slane %v1128_v19, 1  ;;  %v1192_v26 = vadd.f32 %v1191_v20, %v1190_v2  ;;  %v1131_v27 = vrot.slane %v1106_v14, 4 }
 0x381   : > { %3748 = vrcp.f32 %v937_v21  ;;  %v1124_v28 = vadd.f32 %v1123_v23, %v1122_v12  ;;  %v1187_v29 = vrot.slane %v1186_v16, 1  ;;  %v1181_v30 = vmul.f32 %v1106_v14, %v1106_v14 }
 0x382   : > { %v1130_v31 = vadd.f32 %v1129_v25, %v1128_v19  ;;  %v1193_v32 = vrot.slane %v1192_v26, 1  ;;  %v1132_v33 = vadd.f32 %v1131_v27, %v1106_v14  ;;  %v1108_v34 = vadd.f32 %v1107_v15, %v979_v4  ;;  %v1178_v15 = vld [vmem:[#allocation6] sm:$0xf] }
 0x383   : > { %v1188_v35 = vadd.f32 %v1187_v29, %v1186_v16  ;;  %v1195_v36 = vrot.slane %v1181_v30, 4 }
 0x384   : > { %v1147_v37 = vcombine.low %v1124_v28, %v1130_v31  ;;  %v1194_v38 = vadd.f32 %v1193_v32, %v1192_v26  ;;  %v1133_v39 = vrot.slane %v1132_v33, 2  ;;  %1117 = vst [vmem:[#allocation2 + $0x18] sm:$0xff] %v1108_v34  ;;  %v1137_v40 = vrot.slane %v1108_v34, 4 }
 0x385   : > { %v1196_v41 = vadd.f32 %v1195_v36, %v1181_v30  ;;  %v1182_v42 = vmul.f32 %v1108_v34, %v1108_v34 }
 0x386   : > { %v1155_v43 = vrot.slane %v1147_v37, %v4689_v7  ;;  %v1211_v44 = vcombine.low %v1188_v35, %v1194_v38  ;;  %v1134_v45 = vadd.f32 %v1133_v39, %v1132_v33  ;;  %v1138_v46 = vadd.f32 %v1137_v40, %v1108_v34 }
 0x387   : > { %v1197_v47 = vrot.slane %v1196_v41, 2  ;;  %v1201_v48 = vrot.slane %v1182_v42, 4 }
 0x388   : > { %v3743_v49 = vpop.eup %3742  ;;  %v1219_v50 = vrot.slane %v1211_v44, %v4689_v7  ;;  %v1135_v51 = vrot.slane %v1134_v45, 1  ;;  %v1139_v52 = vrot.slane %v1138_v46, 2 }
 0x389   : > { %v3745_v53 = vpop.eup %3744  ;;  %949 = vst [vmem:[#allocation4] sm:$0xff] %v3743_v49  ;;  %v1198_v54 = vadd.f32 %v1197_v47, %v1196_v41  ;;  %v1202_v55 = vadd.f32 %v1201_v48, %v1182_v42 }
 0x38a   : > { %v3747_v56 = vpop.eup %3746  ;;  %951 = vst [vmem:[#allocation4 + $0x10] sm:$0xff] %v3745_v53  ;;  %v1140_v58 = vadd.f32 %v1139_v52, %v1138_v46  ;;  %v1136_v62 = vadd.f32 %v1135_v51, %v1134_v45 }
 0x38b   : > { %v3749_v59 = vpop.eup %3748  ;;  %950 = vst [vmem:[#allocation4 + $0x8] sm:$0xff] %v3747_v56  ;;  %v1199_v60 = vrot.slane %v1198_v54, 1  ;;  %v1203_v61 = vrot.slane %v1202_v55, 2 }
 0x38c   : > { %952 = vst [vmem:[#allocation4 + $0x18] sm:$0xff] %v3749_v59  ;;  %v1141_v63 = vrot.slane %v1140_v58, 1 }
 0x38d   : > { %v1204_v0 = vadd.f32 %v1203_v61, %v1202_v55  ;;  %v1200_v3 = vadd.f32 %v1199_v60, %v1198_v54 }
 0x38e   : > { %v1142_v1 = vadd.f32 %v1141_v63, %v1140_v58 }
 0x38f   : > { %v1205_v4 = vrot.slane %v1204_v0, 1 }
 0x390   : > { %v1148_v5 = vcombine.low %v1136_v62, %v1142_v1 }
 0x391   : > { %v1206_v6 = vadd.f32 %v1205_v4, %v1204_v0 }
 0x392   : > { %v1162_v8 = vrot.slane %v1148_v5, %v4689_v7 }
 0x393   : > { %v1212_v2 = vcombine.low %v1200_v3, %v1206_v6 }
 0x394   : > { %v1163_v9 = vcombine.low %v1155_v43, %v1162_v8 }
 0x395   : > { %v1226_v11 = vrot.slane %v1212_v2, %v4689_v7 }
 0x396   : > { %v1170_v12 = vrot.slane %v1163_v9, %v4689_v7 }
 0x397   : > { %v1227_v13 = vcombine.low %v1219_v50, %v1226_v11 }
 0x398   : > { %v1172_v14 = vadd.f32 %v1170_v12, %v1118_v10 }
 0x399   : > { %v1234_v17 = vrot.slane %v1227_v13, %v4689_v7 }
 0x39a   : > { %1177 = vst.msk [vmem:[#allocation5] sm:$0xf] %vm4669_vm4, %v1172_v14 }
 0x39b   : > { %v1236_v18 = vadd.f32 %v1234_v17, %v1178_v15 }
 0x39d   : > { %1237 = vst.msk [vmem:[#allocation6] sm:$0xf] %vm4669_vm4, %v1236_v18 }
 0x39e PF: > { %p3292_p7 = scmp.ne.s32.totalorder %s4330_s30, 1 }
 0x39f   : > { %v3750_v19 = vld [vmem:[#allocation18 + $0x4] ss:$16 sps:$4 sm:$0xff] (!%p3292_p7)   ;;  %v3752_v20 = vld [vmem:[#allocation18 + $0xc] ss:$16 sps:$4 sm:$0xff] (!%p3292_p7)   ;;  %v3754_v22 = vld [vmem:[#allocation18] ss:$16 sps:$4 sm:$0xff] (!%p3292_p7)   ;;  %v1258_v6 = vlaneseq (!%p3292_p7) }
 0x3a0   : > { %1241 = sbr.rel (%p3292_p7) target bundleno = 1296 (0x510), region = 100  ;;  %2170 = vmatprep.subr.bf16.mxu0 (!%p3292_p7), %v3750_v19  ;;  %v3755_v21 = vld [vmem:[#allocation18 + $0x8] ss:$16 sps:$4 sm:$0xff] (!%p3292_p7)   ;;  %2252 = vmatprep.subr.bf16.mxu1 (!%p3292_p7), %v3752_v20  ;;  %v3756_v23 = vld [vmem:[#allocation18 + $0x24] ss:$16 sps:$4 sm:$0xff] (!%p3292_p7)  }
 0x3a1   : > { %2171 = vmatpush1.bf16.msra.mxu0 (!%p3292_p7), %v3754_v22  ;;  %2253 = vmatpush1.bf16.msra.mxu1 (!%p3292_p7), %v3755_v21  ;;  %v3758_v7 = vld [vmem:[#allocation18 + $0x2c] ss:$16 sps:$4 sm:$0xff] (!%p3292_p7)   ;;  %v3760_v16 = vld [vmem:[#allocation18 + $0x20] ss:$16 sps:$4 sm:$0xff] (!%p3292_p7)   ;;  %v3761_v24 = vld [vmem:[#allocation18 + $0x28] ss:$16 sps:$4 sm:$0xff] (!%p3292_p7)  }
 0x3a2   : > { %2172 = vmatprep.subr.bf16.mxu0 (!%p3292_p7), %v3756_v23  ;;  %2254 = vmatprep.subr.bf16.mxu1 (!%p3292_p7), %v3758_v7  ;;  %v3762_v57 = vld [vmem:[#allocation18 + $0x44] ss:$16 sps:$4 sm:$0xff] (!%p3292_p7)   ;;  %v3764_v25 = vld [vmem:[#allocation18 + $0x4c] ss:$16 sps:$4 sm:$0xff] (!%p3292_p7)   ;;  %v3766_v26 = vld [vmem:[#allocation18 + $0x40] ss:$16 sps:$4 sm:$0xff] (!%p3292_p7)  }
 0x3a3   : > { %v3767_v27 = vld [vmem:[#allocation18 + $0x48] ss:$16 sps:$4 sm:$0xff] (!%p3292_p7)   ;;  %v3768_v28 = vld [vmem:[#allocation18 + $0x64] ss:$16 sps:$4 sm:$0xff] (!%p3292_p7)   ;;  %v3770_v29 = vld [vmem:[#allocation18 + $0x6c] ss:$16 sps:$4 sm:$0xff] (!%p3292_p7)  }
 0x3a4   : > { %v3772_v30 = vld [vmem:[#allocation18 + $0x60] ss:$16 sps:$4 sm:$0xff] (!%p3292_p7)   ;;  %v3773_v31 = vld [vmem:[#allocation18 + $0x68] ss:$16 sps:$4 sm:$0xff] (!%p3292_p7)   ;;  %v3774_v32 = vld [vmem:[#allocation18 + $0x84] ss:$16 sps:$4 sm:$0xff] (!%p3292_p7)  }
 0x3a5   : > { %2173 = vmatpush1.bf16.msra.mxu0 (!%p3292_p7), %v3760_v16  ;;  %2255 = vmatpush1.bf16.msra.mxu1 (!%p3292_p7), %v3761_v24  ;;  %v3776_v33 = vld [vmem:[#allocation18 + $0x8c] ss:$16 sps:$4 sm:$0xff] (!%p3292_p7)   ;;  %v3778_v34 = vld [vmem:[#allocation18 + $0x80] ss:$16 sps:$4 sm:$0xff] (!%p3292_p7)   ;;  %v3779_v35 = vld [vmem:[#allocation18 + $0x88] ss:$16 sps:$4 sm:$0xff] (!%p3292_p7)  }
 0x3a6   : > { %2174 = vmatprep.subr.bf16.mxu0 (!%p3292_p7), %v3762_v57  ;;  %2256 = vmatprep.subr.bf16.mxu1 (!%p3292_p7), %v3764_v25  ;;  %v3780_v36 = vld [vmem:[#allocation18 + $0xa4] ss:$16 sps:$4 sm:$0xff] (!%p3292_p7)   ;;  %v3782_v37 = vld [vmem:[#allocation18 + $0xac] ss:$16 sps:$4 sm:$0xff] (!%p3292_p7)   ;;  %v3784_v38 = vld [vmem:[#allocation18 + $0xa0] ss:$16 sps:$4 sm:$0xff] (!%p3292_p7)  }
 0x3a7   : > { %v3785_v39 = vld [vmem:[#allocation18 + $0xa8] ss:$16 sps:$4 sm:$0xff]   ;;  %v3786_v40 = vld [vmem:[#allocation18 + $0xc4] ss:$16 sps:$4 sm:$0xff]   ;;  %v3788_v41 = vld [vmem:[#allocation18 + $0xcc] ss:$16 sps:$4 sm:$0xff]  }
 0x3a8   : > { %v3790_v42 = vld [vmem:[#allocation18 + $0xc0] ss:$16 sps:$4 sm:$0xff]   ;;  %v3791_v43 = vld [vmem:[#allocation18 + $0xc8] ss:$16 sps:$4 sm:$0xff]   ;;  %v3792_v44 = vld [vmem:[#allocation18 + $0xe4] ss:$16 sps:$4 sm:$0xff]  }
 0x3a9   : > { %2175 = vmatpush1.bf16.msra.mxu0 %v3766_v26  ;;  %2257 = vmatpush1.bf16.msra.mxu1 %v3767_v27  ;;  %v3794_v45 = vld [vmem:[#allocation18 + $0xec] ss:$16 sps:$4 sm:$0xff]   ;;  %v3796_v46 = vld [vmem:[#allocation18 + $0xe0] ss:$16 sps:$4 sm:$0xff]   ;;  %v3797_v47 = vld [vmem:[#allocation18 + $0xe8] ss:$16 sps:$4 sm:$0xff]  }
 0x3aa   : > { %2176 = vmatprep.subr.bf16.mxu0 %v3768_v28  ;;  %2258 = vmatprep.subr.bf16.mxu1 %v3770_v29  ;;  %v3798_v48 = vld [vmem:[#allocation18 + $0x104] ss:$16 sps:$4 sm:$0xff]   ;;  %v3800_v49 = vld [vmem:[#allocation18 + $0x10c] ss:$16 sps:$4 sm:$0xff]   ;;  %v3802_v50 = vld [vmem:[#allocation18 + $0x100] ss:$16 sps:$4 sm:$0xff]  }
 0x3ab   : > { %v3803_v51 = vld [vmem:[#allocation18 + $0x108] ss:$16 sps:$4 sm:$0xff]   ;;  %v3804_v52 = vld [vmem:[#allocation18 + $0x124] ss:$16 sps:$4 sm:$0xff]   ;;  %v3806_v53 = vld [vmem:[#allocation18 + $0x12c] ss:$16 sps:$4 sm:$0xff]  }
 0x3ac   : > { %v3808_v54 = vld [vmem:[#allocation18 + $0x120] ss:$16 sps:$4 sm:$0xff]   ;;  %v3809_v55 = vld [vmem:[#allocation18 + $0x128] ss:$16 sps:$4 sm:$0xff]   ;;  %v3810_v56 = vld [vmem:[#allocation18 + $0x144] ss:$16 sps:$4 sm:$0xff]  }
 0x3ad   : > { %2177 = vmatpush1.bf16.msra.mxu0 %v3772_v30  ;;  %2259 = vmatpush1.bf16.msra.mxu1 %v3773_v31  ;;  %v3812_v58 = vld [vmem:[#allocation18 + $0x14c] ss:$16 sps:$4 sm:$0xff]   ;;  %v3814_v59 = vld [vmem:[#allocation18 + $0x140] ss:$16 sps:$4 sm:$0xff]   ;;  %v3815_v60 = vld [vmem:[#allocation18 + $0x148] ss:$16 sps:$4 sm:$0xff]  }
 0x3ae   : > { %2178 = vmatprep.subr.bf16.mxu0 %v3774_v32  ;;  %2260 = vmatprep.subr.bf16.mxu1 %v3776_v33  ;;  %v3816_v61 = vld [vmem:[#allocation18 + $0x164] ss:$16 sps:$4 sm:$0xff]   ;;  %v3818_v62 = vld [vmem:[#allocation18 + $0x16c] ss:$16 sps:$4 sm:$0xff]   ;;  %v1242_v63 = vld [vmem:[#allocation5] sm:$0xf] }
 0x3af   : > { %v3820_v0 = vld [vmem:[#allocation18 + $0x160] ss:$16 sps:$4 sm:$0xff]   ;;  %v4702_v1 = vmul.f32 0.125, %v1242_v63  ;;  %v1244_v3 = vld [vmem:[#allocation6] sm:$0xf]  ;;  %v4707_v14 = vshrl.u32 %v1258_v6, 7 }
 0x3b0   : > { %v3821_v4 = vld [vmem:[#allocation18 + $0x168] ss:$16 sps:$4 sm:$0xff]   ;;  %v1245_v5 = vmul.f32 0.125, %v1244_v3  ;;  %v3822_v8 = vld [vmem:[#allocation18 + $0x184] ss:$16 sps:$4 sm:$0xff]   ;;  %vm2397_vm7 = vcmp.lt.s32.totalorder %v1258_v6, 512 }
 0x3b1   : > { %2179 = vmatpush1.bf16.msra.mxu0 %v3778_v34  ;;  %2261 = vmatpush1.bf16.msra.mxu1 %v3779_v35  ;;  %v3824_v2 = vld [vmem:[#allocation18 + $0x18c] ss:$16 sps:$4 sm:$0xff]   ;;  %v1246_v9 = vmul.f32 %v4702_v1, %v4702_v1  ;;  %v3826_v10 = vld [vmem:[#allocation18 + $0x180] ss:$16 sps:$4 sm:$0xff]   ;;  %v3827_v11 = vld [vmem:[#allocation18 + $0x188] ss:$16 sps:$4 sm:$0xff]  }
 0x3b2   : > { %2180 = vmatprep.subr.bf16.mxu0 %v3780_v36  ;;  %2262 = vmatprep.subr.bf16.mxu1 %v3782_v37  ;;  %v3828_v13 = vld [vmem:[#allocation18 + $0x1a4] ss:$16 sps:$4 sm:$0xff]   ;;  %v3830_v15 = vld [vmem:[#allocation18 + $0x1ac] ss:$16 sps:$4 sm:$0xff]   ;;  %v3832_v18 = vld [vmem:[#allocation18 + $0x1a0] ss:$16 sps:$4 sm:$0xff]  }
 0x3b3   : > { %v1247_v12 = vsub.f32 %v1245_v5, %v1246_v9  ;;  %v3833_v19 = vld [vmem:[#allocation18 + $0x1a8] ss:$16 sps:$4 sm:$0xff]   ;;  %v3834_v20 = vld [vmem:[#allocation18 + $0x1c4] ss:$16 sps:$4 sm:$0xff]   ;;  %v4710_v22 = vsub.s32 1, %v4707_v14  ;;  %v4713_v21 = vsub.s32 0, %v4707_v14 }
 0x3b4   : > { %v3836_v23 = vld [vmem:[#allocation18 + $0x1cc] ss:$16 sps:$4 sm:$0xff]   ;;  %v3838_v7 = vld [vmem:[#allocation18 + $0x1c0] ss:$16 sps:$4 sm:$0xff]   ;;  %v3839_v16 = vld [vmem:[#allocation18 + $0x1c8] ss:$16 sps:$4 sm:$0xff]  }
 0x3b5   : > { %2181 = vmatpush1.bf16.msra.mxu0 %v3784_v38  ;;  %2263 = vmatpush1.bf16.msra.mxu1 %v3785_v39  ;;  %v1248_v17 = vadd.f32 1e-05, %v1247_v12  ;;  %v3840_v24 = vld [vmem:[#allocation18 + $0x1e4] ss:$16 sps:$4 sm:$0xff]   ;;  %v3842_v57 = vld [vmem:[#allocation18 + $0x1ec] ss:$16 sps:$4 sm:$0xff]   ;;  %v1265_v26 = vrot.slane %v4702_v1, %v4710_v22  ;;  %v1261_v27 = vrot.slane %v4702_v1, %v4713_v21 }
 0x3b6   : > { %2182 = vmatprep.subr.bf16.mxu0 %v3786_v40  ;;  %2264 = vmatprep.subr.bf16.mxu1 %v3788_v41  ;;  %v1254_v25 = vld [vmem:[#allocation2 + $0x8] sm:$0xff]  ;;  %v1253_v28 = vld [vmem:[#allocation2] sm:$0xff] }
 0x3b7   : > { %3942 = vrsqrt.f32 %v1248_v17  ;;  %v3844_v29 = vld [vmem:[#allocation18 + $0x1e0] ss:$16 sps:$4 sm:$0xff]   ;;  %v4719_v30 = vld [vmem:[#allocation21 + $0x4] ss:$8 sm:$0xf]  ;;  %v1279_v33 = vsub.f32 %v1254_v25, %v1265_v26  ;;  %v1278_v35 = vsub.f32 %v1253_v28, %v1261_v27 }
 0x3b8   : > { %v3845_v31 = vld [vmem:[#allocation18 + $0x1e8] ss:$16 sps:$4 sm:$0xff]   ;;  %v4721_v32 = vld [vmem:[#allocation21 + $0x5] ss:$8 sm:$0xf]  ;;  %v1317_v39 = vrot.slane %v4719_v30, %v4710_v22  ;;  %v1313_v41 = vrot.slane %v4719_v30, %v4713_v21 }
 0x3b9   : > { %2183 = vmatpush1.bf16.msra.mxu0 %v3790_v42  ;;  %2265 = vmatpush1.bf16.msra.mxu1 %v3791_v43  ;;  %v3848_v34 = vld [vmem:[#allocation18 + $0x204] ss:$16 sps:$4 sm:$0xff]   ;;  %v3851_v37 = vld [vmem:[#allocation18 + $0x20c] ss:$16 sps:$4 sm:$0xff]   ;;  %v1344_v42 = vrot.slane %v4721_v32, %v4710_v22  ;;  %v3852_v63 = vld [vmem:[#allocation18 + $0x220] ss:$16 sps:$4 sm:$0xff]  }
 0x3ba   : > { %2184 = vmatprep.subr.bf16.mxu0 %v3792_v44  ;;  %2266 = vmatprep.subr.bf16.mxu1 %v3794_v45  ;;  %v1340_v45 = vrot.slane %v4721_v32, %v4713_v21  ;;  %v3860_v3 = vld [vmem:[#allocation18 + $0x244] ss:$16 sps:$4 sm:$0xff]   ;;  %v3858_v5 = vld [vmem:[#allocation18 + $0x240] ss:$16 sps:$4 sm:$0xff]   ;;  %v3873_v26 = vld [vmem:[#allocation18 + $0x288] ss:$16 sps:$4 sm:$0xff]  }
 0x3bb   : > { %v3866_v9 = vld [vmem:[#allocation18 + $0x264] ss:$16 sps:$4 sm:$0xff]   ;;  %v3864_v12 = vld [vmem:[#allocation18 + $0x260] ss:$16 sps:$4 sm:$0xff]  }
 0x3bc   : > { %v3872_v17 = vld [vmem:[#allocation18 + $0x284] ss:$16 sps:$4 sm:$0xff]   ;;  %v3870_v25 = vld [vmem:[#allocation18 + $0x280] ss:$16 sps:$4 sm:$0xff]  }
 0x3bd   : > { %2185 = vmatpush1.bf16.msra.mxu0 %v3796_v46  ;;  %2267 = vmatpush1.bf16.msra.mxu1 %v3797_v47  ;;  %v3878_v28 = vld [vmem:[#allocation18 + $0x2a4] ss:$16 sps:$4 sm:$0xff]  }
 0x3be   : > { %2186 = vmatprep.subr.bf16.mxu0 %v3798_v48  ;;  %2268 = vmatprep.subr.bf16.mxu1 %v3800_v49  ;;  %v1368_v49 = vld [vmem:[#allocation4 + $0x8] sm:$0xff] }
 0x3c1   : > { %2187 = vmatpush1.bf16.msra.mxu0 %v3802_v50  ;;  %2269 = vmatpush1.bf16.msra.mxu1 %v3803_v51  ;;  %v4723_v36 = vpop.eup %3942  ;;  %v1367_v51 = vld [vmem:[#allocation4] sm:$0xff] }
 0x3c2   : > { %2188 = vmatprep.subr.bf16.mxu0 %v3804_v52  ;;  %2270 = vmatprep.subr.bf16.mxu1 %v3806_v53  ;;  %v1290_v38 = vrot.slane %v4723_v36, %v4710_v22  ;;  %v1286_v40 = vrot.slane %v4723_v36, %v4713_v21 }
 0x3c4   : > { %v1304_v43 = vmul.f32 %v1290_v38, %v1279_v33  ;;  %v1303_v44 = vmul.f32 %v1286_v40, %v1278_v35  ;;  %v3879_v38 = vld [vmem:[#allocation18 + $0x2a8] ss:$16 sps:$4 sm:$0xff]   ;;  %v3887_v40 = vld [vmem:[#allocation18 + $0x2cc] ss:$16 sps:$4 sm:$0xff]  }
 0x3c5   : > { %2189 = vmatpush1.bf16.msra.mxu0 %v3808_v54  ;;  %2271 = vmatpush1.bf16.msra.mxu1 %v3809_v55 }
 0x3c6   : > { %2190 = vmatprep.subr.bf16.mxu0 %v3810_v56  ;;  %2272 = vmatprep.subr.bf16.mxu1 %v3812_v58  ;;  %v1331_v46 = vmul.f32 %v1317_v39, %v1304_v43  ;;  %v1330_v47 = vmul.f32 %v1313_v41, %v1303_v44  ;;  %v3846_v56 = vld [vmem:[#allocation18 + $0x200] ss:$16 sps:$4 sm:$0xff]  }
 0x3c8   : > { %v1358_v48 = vadd.f32 %v1344_v42, %v1331_v46  ;;  %v1357_v50 = vadd.f32 %v1340_v45, %v1330_v47  ;;  %v1370_v42 = vld [vmem:[#allocation4 + $0x18] sm:$0xff]  ;;  %v3882_v45 = vld [vmem:[#allocation18 + $0x2c0] ss:$16 sps:$4 sm:$0xff]  }
 0x3c9   : > { %2191 = vmatpush1.bf16.msra.mxu0 %v3814_v59  ;;  %2273 = vmatpush1.bf16.msra.mxu1 %v3815_v60  ;;  %v3849_v59 = vld [vmem:[#allocation18 + $0x208] ss:$16 sps:$4 sm:$0xff]   ;;  %v3893_v47 = vld [vmem:[#allocation18 + $0x2ec] ss:$16 sps:$4 sm:$0xff]  }
 0x3ca   : > { %2192 = vmatprep.subr.bf16.mxu0 %v3816_v61  ;;  %2274 = vmatprep.subr.bf16.mxu1 %v3818_v62  ;;  %v1362_v52 = vmax.f32 %v1358_v48, 0.0  ;;  %v1361_v53 = vmax.f32 %v1357_v50, 0.0  ;;  %v3854_v61 = vld [vmem:[#allocation18 + $0x224] ss:$16 sps:$4 sm:$0xff]   ;;  %v3857_v62 = vld [vmem:[#allocation18 + $0x22c] ss:$16 sps:$4 sm:$0xff]  }
 0x3cb   : > { %v3885_v46 = vld [vmem:[#allocation18 + $0x2c8] ss:$16 sps:$4 sm:$0xff]   ;;  %v3888_v50 = vld [vmem:[#allocation18 + $0x2e0] ss:$16 sps:$4 sm:$0xff]  }
 0x3cc   : > { %v1372_v54 = vmul.f32 %v1368_v49, %v1362_v52  ;;  %v1371_v55 = vmul.f32 %v1367_v51, %v1361_v53  ;;  %v3891_v51 = vld [vmem:[#allocation18 + $0x2e8] ss:$16 sps:$4 sm:$0xff]   ;;  %v3896_v52 = vld [vmem:[#allocation18 + $0x304] ss:$16 sps:$4 sm:$0xff]   ;;  %v3899_v53 = vld [vmem:[#allocation18 + $0x30c] ss:$16 sps:$4 sm:$0xff]  }
 0x3cd   : > { %2193 = vmatpush1.bf16.msra.mxu0 %v3820_v0  ;;  %2275 = vmatpush1.bf16.msra.mxu1 %v3821_v4  ;;  %v3855_v0 = vld [vmem:[#allocation18 + $0x228] ss:$16 sps:$4 sm:$0xff]   ;;  %v3863_v4 = vld [vmem:[#allocation18 + $0x24c] ss:$16 sps:$4 sm:$0xff]  }
 0x3ce   : > { %2194 = vmatprep.subr.bf16.mxu0 %v3822_v8  ;;  %2276 = vmatprep.subr.bf16.mxu1 %v3824_v2  ;;  %v1376_v58 = vpack.c.bf16 %v1372_v54, %v1372_v54  ;;  %v1375_v60 = vpack.c.bf16 %v1371_v55, %v1371_v55  ;;  %v4738_v8 = vsub.s32 3, %v4707_v14  ;;  %v3861_v2 = vld [vmem:[#allocation18 + $0x248] ss:$16 sps:$4 sm:$0xff]   ;;  %v3894_v54 = vld [vmem:[#allocation18 + $0x300] ss:$16 sps:$4 sm:$0xff]  }
 0x3cf   : > { %v3897_v55 = vld [vmem:[#allocation18 + $0x308] ss:$16 sps:$4 sm:$0xff]  }
 0x3d0   : > { %2202 = vmatprep.mubr.bf16.mxu0 %v1376_v58  ;;  %2284 = vmatprep.mubr.bf16.mxu1 %v1376_v58  ;;  %v1352_v33 = vrot.slane %v4721_v32, %v4738_v8  ;;  %v3905_v58 = vld [vmem:[#allocation18 + $0x32c] ss:$16 sps:$4 sm:$0xff]  }
 0x3d1   : > { %2195 = vmatpush1.bf16.msra.mxu0 %v3826_v10  ;;  %2277 = vmatpush1.bf16.msra.mxu1 %v3827_v11  ;;  %v4741_v10 = vsub.s32 2, %v4707_v14  ;;  %v3869_v11 = vld [vmem:[#allocation18 + $0x26c] ss:$16 sps:$4 sm:$0xff]  }
 0x3d2   : > { %2196 = vmatprep.subr.bf16.mxu0 %v3828_v13  ;;  %2278 = vmatprep.subr.bf16.mxu1 %v3830_v15  ;;  %v1273_v13 = vrot.slane %v4702_v1, %v4738_v8  ;;  %v3867_v15 = vld [vmem:[#allocation18 + $0x268] ss:$16 sps:$4 sm:$0xff]  }
 0x3d3   : > { %v1321_v27 = vrot.slane %v4719_v30, %v4741_v10  ;;  %v1348_v35 = vrot.slane %v4721_v32, %v4741_v10  ;;  %v3890_v32 = vld [vmem:[#allocation18 + $0x2e4] ss:$16 sps:$4 sm:$0xff]  }
 0x3d5   : > { %2197 = vmatpush1.bf16.msra.mxu0 %v3832_v18  ;;  %2279 = vmatpush1.bf16.msra.mxu1 %v3833_v19  ;;  %v1269_v18 = vrot.slane %v4702_v1, %v4741_v10  ;;  %v3875_v19 = vld [vmem:[#allocation18 + $0x28c] ss:$16 sps:$4 sm:$0xff]  }
 0x3d6   : > { %2198 = vmatprep.subr.bf16.mxu0 %v3834_v20  ;;  %2280 = vmatprep.subr.bf16.mxu1 %v3836_v23  ;;  %v1298_v20 = vrot.slane %v4723_v36, %v4738_v8  ;;  %v1256_v23 = vld [vmem:[#allocation2 + $0x18] sm:$0xff] }
 0x3d9   : > { %2199 = vmatpush1.bf16.msra.mxu0 %v3838_v7  ;;  %2281 = vmatpush1.bf16.msra.mxu1 %v3839_v16  ;;  %v1294_v7 = vrot.slane %v4723_v36, %v4741_v10  ;;  %v1281_v16 = vsub.f32 %v1256_v23, %v1273_v13  ;;  %v3921_v13 = vld [vmem:[#allocation18 + $0x388] ss:$16 sps:$4 sm:$0xff]   ;;  %v3935_v23 = vld [vmem:[#allocation18 + $0x3cc] ss:$16 sps:$4 sm:$0xff]  }
 0x3da   : > { %2200 = vmatprep.subr.bf16.mxu0 %v3840_v24  ;;  %2282 = vmatprep.subr.bf16.mxu1 %v3842_v57  ;;  %v1325_v24 = vrot.slane %v4719_v30, %v4738_v8  ;;  %v1255_v57 = vld [vmem:[#allocation2 + $0x10] sm:$0xff] }
 0x3db   : > { %v1280_v1 = vsub.f32 %v1255_v57, %v1269_v18  ;;  %v3884_v30 = vld [vmem:[#allocation18 + $0x2c4] ss:$16 sps:$4 sm:$0xff]   ;;  %v3924_v18 = vld [vmem:[#allocation18 + $0x3a0] ss:$16 sps:$4 sm:$0xff]  }
 0x3dc   : > { %v1369_v57 = vld [vmem:[#allocation4 + $0x10] sm:$0xff] }
 0x3dd   : > { %2201 = vmatpush1.bf16.msra.mxu0 %v3844_v29  ;;  %2283 = vmatpush1.bf16.msra.mxu1 %v3845_v31  ;;  %v3881_v29 = vld [vmem:[#allocation18 + $0x2ac] ss:$16 sps:$4 sm:$0xff]   ;;  %v1306_v31 = vmul.f32 %v1298_v20, %v1281_v16  ;;  %v3932_v20 = vld [vmem:[#allocation18 + $0x3c4] ss:$16 sps:$4 sm:$0xff]   ;;  %v3930_v16 = vld [vmem:[#allocation18 + $0x3c0] ss:$16 sps:$4 sm:$0xff]  }
 0x3de   : > { %2211 = vmatprep.subr.bf16.mxu0 %v3848_v34  ;;  %2293 = vmatprep.subr.bf16.mxu1 %v3851_v37  ;;  %v1305_v34 = vmul.f32 %v1294_v7, %v1280_v1  ;;  %v3876_v37 = vld [vmem:[#allocation18 + $0x2a0] ss:$16 sps:$4 sm:$0xff]  }
 0x3df   : > { %v1333_v36 = vmul.f32 %v1325_v24, %v1306_v31  ;;  %v3933_v24 = vld [vmem:[#allocation18 + $0x3c8] ss:$16 sps:$4 sm:$0xff]   ;;  %v1508_v31 = vld [vmem:[#allocation21 + $0x6] ss:$8 sm:$0xf] }
 0x3e0   : > { %2203 = vmatmul.mubr.bf16.vlgmr.msra.gmra.mrb[0].mxu0 %v1375_v60  ;;  %2285 = vmatmul.mubr.bf16.vlgmr.msra.gmra.mrb[0].mxu1 %v1375_v60  ;;  %v1332_v39 = vmul.f32 %v1321_v27, %v1305_v34  ;;  %v3903_v60 = vld [vmem:[#allocation18 + $0x328] ss:$16 sps:$4 sm:$0xff]   ;;  %v3936_v27 = vld [vmem:[#allocation18 + $0x3e0] ss:$16 sps:$4 sm:$0xff]  }
 0x3e1   : > { %2212 = vmatpush1.bf16.msra.mxu0 %v3846_v56  ;;  %2294 = vmatpush1.bf16.msra.mxu1 %v3849_v59  ;;  %v1360_v41 = vadd.f32 %v1352_v33, %v1333_v36  ;;  %v3902_v56 = vld [vmem:[#allocation18 + $0x324] ss:$16 sps:$4 sm:$0xff]   ;;  %v3900_v59 = vld [vmem:[#allocation18 + $0x320] ss:$16 sps:$4 sm:$0xff]   ;;  %v4360_v33 = vmov 1966171168   ;;  %v1521_v36 = vrot.slane %v1508_v31, %v4741_v10 }
 0x3e2   : > { %2213 = vmatprep.subr.bf16.mxu0 %v3854_v61  ;;  %2295 = vmatprep.subr.bf16.mxu1 %v3857_v62  ;;  %v4759_v43 = vadd.f32 %v1348_v35, %v1332_v39  ;;  %v3908_v61 = vld [vmem:[#allocation18 + $0x344] ss:$16 sps:$4 sm:$0xff]   ;;  %v3911_v62 = vld [vmem:[#allocation18 + $0x34c] ss:$16 sps:$4 sm:$0xff]   ;;  %v2372_v34 = vunpack.c.l.s4 %v4360_v33  ;;  %v1513_v35 = vrot.slane %v1508_v31, %v4713_v21  ;;  %v1525_v39 = vrot.slane %v1508_v31, %v4738_v8 }
 0x3e3   : > { %v1364_v44 = vmax.f32 %v1360_v41, 0.0 }
 0x3e4   : > { %v1363_v7 = vmax.f32 %v4759_v43, 0.0 }
 0x3e5   : > { %2214 = vmatpush1.bf16.msra.mxu0 %v3852_v63  ;;  %2296 = vmatpush1.bf16.msra.mxu1 %v3855_v0  ;;  %v1374_v48 = vmul.f32 %v1370_v42, %v1364_v44  ;;  %v3906_v63 = vld [vmem:[#allocation18 + $0x340] ss:$16 sps:$4 sm:$0xff]   ;;  %v3909_v0 = vld [vmem:[#allocation18 + $0x348] ss:$16 sps:$4 sm:$0xff]  }
 0x3e6   : > { %2215 = vmatprep.subr.bf16.mxu0 %v3860_v3  ;;  %2297 = vmatprep.subr.bf16.mxu1 %v3863_v4  ;;  %v3914_v3 = vld [vmem:[#allocation18 + $0x364] ss:$16 sps:$4 sm:$0xff]   ;;  %v3917_v4 = vld [vmem:[#allocation18 + $0x36c] ss:$16 sps:$4 sm:$0xff]   ;;  %v1373_v1 = vmul.f32 %v1369_v57, %v1363_v7 }
 0x3e7   : > { %v1378_v49 = vpack.c.bf16 %v1374_v48, %v1374_v48 }
 0x3e9   : > { %2216 = vmatpush1.bf16.msra.mxu0 %v3858_v5  ;;  %2298 = vmatpush1.bf16.msra.mxu1 %v3861_v2  ;;  %v3912_v5 = vld [vmem:[#allocation18 + $0x360] ss:$16 sps:$4 sm:$0xff]   ;;  %v3915_v2 = vld [vmem:[#allocation18 + $0x368] ss:$16 sps:$4 sm:$0xff]  }
 0x3ea   : > { %2217 = vmatprep.subr.bf16.mxu0 %v3866_v9  ;;  %2299 = vmatprep.subr.bf16.mxu1 %v3869_v11  ;;  %v3920_v9 = vld [vmem:[#allocation18 + $0x384] ss:$16 sps:$4 sm:$0xff]   ;;  %v3923_v11 = vld [vmem:[#allocation18 + $0x38c] ss:$16 sps:$4 sm:$0xff]  }
 0x3eb   : > { %2243 = vmatprep.mubr.bf16.mxu0 %v1378_v49  ;;  %2325 = vmatprep.mubr.bf16.mxu1 %v1378_v49 }
 0x3ed   : > { %2218 = vmatpush1.bf16.msra.mxu0 %v3864_v12  ;;  %2300 = vmatpush1.bf16.msra.mxu1 %v3867_v15  ;;  %v3918_v12 = vld [vmem:[#allocation18 + $0x380] ss:$16 sps:$4 sm:$0xff]   ;;  %v3926_v15 = vld [vmem:[#allocation18 + $0x3a4] ss:$16 sps:$4 sm:$0xff]  }
 0x3ee   : > { %2219 = vmatprep.subr.bf16.mxu0 %v3872_v17  ;;  %2301 = vmatprep.subr.bf16.mxu1 %v3875_v19  ;;  %v3929_v17 = vld [vmem:[#allocation18 + $0x3ac] ss:$16 sps:$4 sm:$0xff]   ;;  %v3927_v19 = vld [vmem:[#allocation18 + $0x3a8] ss:$16 sps:$4 sm:$0xff]  }
 0x3f1   : > { %2220 = vmatpush1.bf16.msra.mxu0 %v3870_v25  ;;  %2302 = vmatpush1.bf16.msra.mxu1 %v3873_v26  ;;  %v3938_v25 = vld [vmem:[#allocation18 + $0x3e4] ss:$16 sps:$4 sm:$0xff]   ;;  %v3941_v26 = vld [vmem:[#allocation18 + $0x3ec] ss:$16 sps:$4 sm:$0xff]  }
 0x3f2   : > { %2221 = vmatprep.subr.bf16.mxu0 %v3878_v28  ;;  %2303 = vmatprep.subr.bf16.mxu1 %v3881_v29  ;;  %v3939_v28 = vld [vmem:[#allocation18 + $0x3e8] ss:$16 sps:$4 sm:$0xff]   ;;  %v1377_v29 = vpack.c.bf16 %v1373_v1, %v1373_v1 }
 0x3f5   : > { %2222 = vmatpush1.bf16.msra.mxu0 %v3876_v37  ;;  %2304 = vmatpush1.bf16.msra.mxu1 %v3879_v38  ;;  %v1517_v37 = vrot.slane %v1508_v31, %v4710_v22  ;;  %v2373_v38 = vunpack.c.0.s8 %v2372_v34 }
 0x3f6   : > { %2223 = vmatprep.subr.bf16.mxu0 %v3884_v30  ;;  %2305 = vmatprep.subr.bf16.mxu1 %v3887_v40 }
 0x3f9   : > { %2224 = vmatpush1.bf16.msra.mxu0 %v3882_v45  ;;  %2306 = vmatpush1.bf16.msra.mxu1 %v3885_v46  ;;  %v4767_v46 = vsub.s32 %v2373_v38, %v4707_v14 }
 0x3fa   : > { %2225 = vmatprep.subr.bf16.mxu0 %v3890_v32  ;;  %2307 = vmatprep.subr.bf16.mxu1 %v3893_v47 }
 0x3fd   : > { %2226 = vmatpush1.bf16.msra.mxu0 %v3888_v50  ;;  %2308 = vmatpush1.bf16.msra.mxu1 %v3891_v51 }
 0x3fe   : > { %2227 = vmatprep.subr.bf16.mxu0 %v3896_v52  ;;  %2309 = vmatprep.subr.bf16.mxu1 %v3899_v53 }
 0x401   : > { %2228 = vmatpush1.bf16.msra.mxu0 %v3894_v54  ;;  %2310 = vmatpush1.bf16.msra.mxu1 %v3897_v55 }
 0x402   : > { %2229 = vmatprep.subr.bf16.mxu0 %v3902_v56  ;;  %2311 = vmatprep.subr.bf16.mxu1 %v3905_v58 }
 0x405   : > { %2230 = vmatpush1.bf16.msra.mxu0 %v3900_v59  ;;  %2312 = vmatpush1.bf16.msra.mxu1 %v3903_v60 }
 0x406   : > { %2231 = vmatprep.subr.bf16.mxu0 %v3908_v61  ;;  %2313 = vmatprep.subr.bf16.mxu1 %v3911_v62 }
 0x409   : > { %2232 = vmatpush1.bf16.msra.mxu0 %v3906_v63  ;;  %2314 = vmatpush1.bf16.msra.mxu1 %v3909_v0 }
 0x40a   : > { %2233 = vmatprep.subr.bf16.mxu0 %v3914_v3  ;;  %2315 = vmatprep.subr.bf16.mxu1 %v3917_v4 }
 0x40d   : > { %2234 = vmatpush1.bf16.msra.mxu0 %v3912_v5  ;;  %2316 = vmatpush1.bf16.msra.mxu1 %v3915_v2 }
 0x40e   : > { %2235 = vmatprep.subr.bf16.mxu0 %v3920_v9  ;;  %2317 = vmatprep.subr.bf16.mxu1 %v3923_v11 }
 0x411   : > { %2236 = vmatpush1.bf16.msra.mxu0 %v3918_v12  ;;  %2318 = vmatpush1.bf16.msra.mxu1 %v3921_v13 }
 0x412   : > { %2237 = vmatprep.subr.bf16.mxu0 %v3926_v15  ;;  %2319 = vmatprep.subr.bf16.mxu1 %v3929_v17 }
 0x415   : > { %2238 = vmatpush1.bf16.msra.mxu0 %v3924_v18  ;;  %2320 = vmatpush1.bf16.msra.mxu1 %v3927_v19 }
 0x416   : > { %2239 = vmatprep.subr.bf16.mxu0 %v3932_v20  ;;  %2321 = vmatprep.subr.bf16.mxu1 %v3935_v23 }
 0x419   : > { %2240 = vmatpush1.bf16.msra.mxu0 %v3930_v16  ;;  %2322 = vmatpush1.bf16.msra.mxu1 %v3933_v24 }
 0x41a   : > { %2241 = vmatprep.subr.bf16.mxu0 %v3938_v25  ;;  %2323 = vmatprep.subr.bf16.mxu1 %v3941_v26 }
 0x41d   : > { %2242 = vmatpush1.bf16.msra.mxu0 %v3936_v27  ;;  %2324 = vmatpush1.bf16.msra.mxu1 %v3939_v28 }
 0x420   : > { %2244 = vmatmul.mubr.bf16.vlgmr.msra.gmra.mrb[0].mxu0 %v1377_v29  ;;  %2326 = vmatmul.mubr.bf16.vlgmr.msra.gmra.mrb[0].mxu1 %v1377_v29 }
 0x4f3   : > { %v2245_v30 = vpop.f32.mrb[0].mxu0  ;;  %v2327_v40 = vpop.f32.mrb[0].mxu1 }
 0x4f4   : > { %v3527_v41 = vadd.f32 %v2245_v30, %v1513_v35  ;;  %v3529_v42 = vadd.f32 %v2327_v40, %v1521_v36  ;;  %v2247_v43 = vpop.f32.mrb[1].mxu0  ;;  %v2329_v44 = vpop.f32.mrb[1].mxu1 }
 0x4f5   : > { %v3528_v45 = vadd.f32 %v2247_v43, %v1517_v37  ;;  %v3530_v32 = vadd.f32 %v2329_v44, %v1525_v39  ;;  %v2249_v47 = vpop.f32.mrb[2].mxu0  ;;  %v2331_v21 = vpop.f32.mrb[2].mxu1 }
 0x4f6   : > { %2336 = vst [vmem:[#allocation3] sm:$0xff] %v3527_v41  ;;  %v2341_v10 = vrot.slane %v3527_v41, 4  ;;  %v2401_v48 = vmul.f32 %v3527_v41, %v3527_v41  ;;  %2338 = vst [vmem:[#allocation3 + $0x10] sm:$0xff] %v3529_v42  ;;  %v2353_v22 = vrot.slane %v3529_v42, 4  ;;  %v2403_v49 = vmul.f32 %v3529_v42, %v3529_v42  ;;  %v2250_v8 = vpop.f32.mrb[3].mxu0  ;;  %v2332_v50 = vpop.f32.mrb[3].mxu1 }
 0x4f7   : > { %2337 = vst [vmem:[#allocation3 + $0x8] sm:$0xff] %v3528_v45  ;;  %v2347_v51 = vrot.slane %v3528_v45, 4  ;;  %v2402_v52 = vmul.f32 %v3528_v45, %v3528_v45  ;;  %2339 = vst [vmem:[#allocation3 + $0x18] sm:$0xff] %v3530_v32  ;;  %v2359_v53 = vrot.slane %v3530_v32, 4  ;;  %v2404_v54 = vmul.f32 %v3530_v32, %v3530_v32  ;;  %v2400_v8 = vld [vmem:[#allocation8] sm:$0xf] }
 0x4f8   : > { %v2342_v55 = vadd.f32 %v3527_v41, %v2341_v10  ;;  %v2405_v14 = vrot.slane %v2401_v48, 4  ;;  %v2354_v56 = vadd.f32 %v3529_v42, %v2353_v22  ;;  %v2417_v58 = vrot.slane %v2403_v49, 4 }
 0x4f9   : > { %v2348_v59 = vadd.f32 %v3528_v45, %v2347_v51  ;;  %v2411_v60 = vrot.slane %v2402_v52, 4  ;;  %v2360_v61 = vadd.f32 %v3530_v32, %v2359_v53  ;;  %v2423_v62 = vrot.slane %v2404_v54, 4 }
 0x4fa   : > { %v2343_v63 = vrot.slane %v2342_v55, 2  ;;  %v2406_v0 = vadd.f32 %v2405_v14, %v2401_v48  ;;  %v2355_v3 = vrot.slane %v2354_v56, 2  ;;  %v2418_v4 = vadd.f32 %v2417_v58, %v2403_v49  ;;  %v2340_v48 = vld [vmem:[#allocation7] sm:$0xf] }
 0x4fb   : > { %v2349_v5 = vrot.slane %v2348_v59, 2  ;;  %v2412_v2 = vadd.f32 %v2411_v60, %v2402_v52  ;;  %v2361_v9 = vrot.slane %v2360_v61, 2  ;;  %v2424_v11 = vadd.f32 %v2423_v62, %v2404_v54 }
 0x4fc   : > { %v2344_v12 = vadd.f32 %v2343_v63, %v2342_v55  ;;  %v2407_v13 = vrot.slane %v2406_v0, 2  ;;  %v2356_v15 = vadd.f32 %v2355_v3, %v2354_v56  ;;  %v2419_v17 = vrot.slane %v2418_v4, 2 }
 0x4fd   : > { %v2350_v18 = vadd.f32 %v2349_v5, %v2348_v59  ;;  %v2413_v19 = vrot.slane %v2412_v2, 2  ;;  %v2362_v20 = vadd.f32 %v2361_v9, %v2360_v61  ;;  %v2425_v23 = vrot.slane %v2424_v11, 2 }
 0x4fe   : > { %v2345_v7 = vrot.slane %v2344_v12, 1  ;;  %v2408_v16 = vadd.f32 %v2407_v13, %v2406_v0  ;;  %v2357_v24 = vrot.slane %v2356_v15, 1  ;;  %v2420_v57 = vadd.f32 %v2419_v17, %v2418_v4 }
 0x4ff   : > { %v2351_v25 = vrot.slane %v2350_v18, 1  ;;  %v2414_v26 = vadd.f32 %v2413_v19, %v2412_v2  ;;  %v2363_v1 = vrot.slane %v2362_v20, 1  ;;  %v2426_v27 = vadd.f32 %v2425_v23, %v2424_v11 }
 0x500   : > { %v2346_v28 = vadd.f32 %v2345_v7, %v2344_v12  ;;  %v2409_v29 = vrot.slane %v2408_v16, 1  ;;  %v2358_v31 = vadd.f32 %v2357_v24, %v2356_v15  ;;  %v2421_v33 = vrot.slane %v2420_v57, 1 }
 0x501   : > { %v2352_v34 = vadd.f32 %v2351_v25, %v2350_v18  ;;  %v2415_v35 = vrot.slane %v2414_v26, 1  ;;  %v2364_v36 = vadd.f32 %v2363_v1, %v2362_v20  ;;  %v2427_v37 = vrot.slane %v2426_v27, 1 }
 0x502   : > { %v2410_v38 = vadd.f32 %v2409_v29, %v2408_v16  ;;  %v2422_v39 = vadd.f32 %v2421_v33, %v2420_v57 }
 0x503   : > { %v2369_v30 = vcombine.low %v2346_v28, %v2352_v34  ;;  %v2416_v40 = vadd.f32 %v2415_v35, %v2414_v26  ;;  %v2370_v41 = vcombine.low %v2358_v31, %v2364_v36  ;;  %v2428_v42 = vadd.f32 %v2427_v37, %v2426_v27 }
 0x505   : > { %v2377_v43 = vrot.slane %v2369_v30, %v4767_v46  ;;  %v2433_v44 = vcombine.low %v2410_v38, %v2416_v40  ;;  %v2384_v45 = vrot.slane %v2370_v41, %v4767_v46  ;;  %v2434_v32 = vcombine.low %v2422_v39, %v2428_v42 }
 0x507   : > { %v2441_v47 = vrot.slane %v2433_v44, %v4767_v46  ;;  %v2385_v21 = vcombine.low %v2377_v43, %v2384_v45  ;;  %v2448_v10 = vrot.slane %v2434_v32, %v4767_v46 }
 0x509   : > { %v2392_v22 = vrot.slane %v2385_v21, %v4767_v46  ;;  %v2449_v49 = vcombine.low %v2441_v47, %v2448_v10 }
 0x50b   : > { %v2394_v50 = vadd.f32 %v2392_v22, %v2340_v48  ;;  %v2456_v51 = vrot.slane %v2449_v49, %v4767_v46 }
 0x50d   : > { %2399 = vst.msk [vmem:[#allocation7] sm:$0xf] %vm2397_vm7, %v2394_v50  ;;  %v2458_v52 = vadd.f32 %v2456_v51, %v2400_v8 }
 0x50f   : > { %2459 = vst.msk [vmem:[#allocation8] sm:$0xf] %vm2397_vm7, %v2458_v52 }
 0x510 PF: > { %p3421_p2 = scmp.ne.s32.totalorder %s4330_s30, 2 }
 0x511   : > { %v3944_v53 = vld [vmem:[#allocation20 + $0x4] ss:$8 sps:$4 sm:$0xff] (!%p3421_p2)   ;;  %v3948_v55 = vld [vmem:[#allocation20] ss:$8 sps:$4 sm:$0xff] (!%p3421_p2)   ;;  %v3950_v56 = vld [vmem:[#allocation20 + $0x14] ss:$8 sps:$4 sm:$0xff] (!%p3421_p2)   ;;  %v2480_v42 = vlaneseq (!%p3421_p2) }
 0x512   : > { %2463 = sbr.rel (%p3421_p2) target bundleno = 1580 (0x62c), region = 104  ;;  %v3946_v54 = vld [vmem:[#allocation20 + $0x104] ss:$8 sps:$4 sm:$0xff] (!%p3421_p2)   ;;  %2988 = vmatprep.subr.bf16.mxu1 (!%p3421_p2), %v3944_v53  ;;  %v3949_v14 = vld [vmem:[#allocation20 + $0x100] ss:$8 sps:$4 sm:$0xff] (!%p3421_p2)  }
 0x513   : > { %3029 = vmatprep.subr.bf16.mxu0 (!%p3421_p2), %v3946_v54  ;;  %2989 = vmatpush1.bf16.msra.mxu1 (!%p3421_p2), %v3948_v55  ;;  %v3952_v6 = vld [vmem:[#allocation20 + $0x114] ss:$8 sps:$4 sm:$0xff] (!%p3421_p2)   ;;  %v3954_v58 = vld [vmem:[#allocation20 + $0x10] ss:$8 sps:$4 sm:$0xff] (!%p3421_p2)   ;;  %v3956_v59 = vld [vmem:[#allocation20 + $0x24] ss:$8 sps:$4 sm:$0xff] (!%p3421_p2)  }
 0x514   : > { %3030 = vmatpush1.bf16.msra.mxu0 (!%p3421_p2), %v3949_v14  ;;  %2990 = vmatprep.subr.bf16.mxu1 (!%p3421_p2), %v3950_v56  ;;  %v3955_v46 = vld [vmem:[#allocation20 + $0x110] ss:$8 sps:$4 sm:$0xff] (!%p3421_p2)   ;;  %v3958_v60 = vld [vmem:[#allocation20 + $0x124] ss:$8 sps:$4 sm:$0xff] (!%p3421_p2)   ;;  %v3960_v61 = vld [vmem:[#allocation20 + $0x20] ss:$8 sps:$4 sm:$0xff] (!%p3421_p2)  }
 0x515   : > { %3031 = vmatprep.subr.bf16.mxu0 (!%p3421_p2), %v3952_v6  ;;  %v3961_v62 = vld [vmem:[#allocation20 + $0x120] ss:$8 sps:$4 sm:$0xff] (!%p3421_p2)   ;;  %v3962_v63 = vld [vmem:[#allocation20 + $0x34] ss:$8 sps:$4 sm:$0xff] (!%p3421_p2)   ;;  %v3966_v3 = vld [vmem:[#allocation20 + $0x30] ss:$8 sps:$4 sm:$0xff] (!%p3421_p2)  }
 0x516   : > { %v3964_v0 = vld [vmem:[#allocation20 + $0x134] ss:$8 sps:$4 sm:$0xff] (!%p3421_p2)   ;;  %v3967_v4 = vld [vmem:[#allocation20 + $0x130] ss:$8 sps:$4 sm:$0xff] (!%p3421_p2)   ;;  %v3968_v5 = vld [vmem:[#allocation20 + $0x44] ss:$8 sps:$4 sm:$0xff] (!%p3421_p2)  }
 0x517   : > { %2991 = vmatpush1.bf16.msra.mxu1 (!%p3421_p2), %v3954_v58  ;;  %v3970_v2 = vld [vmem:[#allocation20 + $0x144] ss:$8 sps:$4 sm:$0xff] (!%p3421_p2)   ;;  %v3972_v9 = vld [vmem:[#allocation20 + $0x40] ss:$8 sps:$4 sm:$0xff] (!%p3421_p2)   ;;  %v3974_v12 = vld [vmem:[#allocation20 + $0x54] ss:$8 sps:$4 sm:$0xff] (!%p3421_p2)  }
 0x518   : > { %3032 = vmatpush1.bf16.msra.mxu0 (!%p3421_p2), %v3955_v46  ;;  %2992 = vmatprep.subr.bf16.mxu1 (!%p3421_p2), %v3956_v59  ;;  %v3973_v11 = vld [vmem:[#allocation20 + $0x140] ss:$8 sps:$4 sm:$0xff] (!%p3421_p2)   ;;  %v3976_v13 = vld [vmem:[#allocation20 + $0x154] ss:$8 sps:$4 sm:$0xff] (!%p3421_p2)   ;;  %v3978_v15 = vld [vmem:[#allocation20 + $0x50] ss:$8 sps:$4 sm:$0xff] (!%p3421_p2)  }
 0x519   : > { %3033 = vmatprep.subr.bf16.mxu0 %v3958_v60  ;;  %v3979_v17 = vld [vmem:[#allocation20 + $0x150] ss:$8 sps:$4 sm:$0xff]   ;;  %v3980_v18 = vld [vmem:[#allocation20 + $0x64] ss:$8 sps:$4 sm:$0xff]   ;;  %v3984_v20 = vld [vmem:[#allocation20 + $0x60] ss:$8 sps:$4 sm:$0xff]  }
 0x51a   : > { %v3982_v19 = vld [vmem:[#allocation20 + $0x164] ss:$8 sps:$4 sm:$0xff]   ;;  %v3985_v23 = vld [vmem:[#allocation20 + $0x160] ss:$8 sps:$4 sm:$0xff]   ;;  %v3986_v7 = vld [vmem:[#allocation20 + $0x74] ss:$8 sps:$4 sm:$0xff]  }
 0x51b   : > { %2993 = vmatpush1.bf16.msra.mxu1 %v3960_v61  ;;  %v3988_v16 = vld [vmem:[#allocation20 + $0x174] ss:$8 sps:$4 sm:$0xff]   ;;  %v3990_v24 = vld [vmem:[#allocation20 + $0x70] ss:$8 sps:$4 sm:$0xff]   ;;  %v3992_v25 = vld [vmem:[#allocation20 + $0x84] ss:$8 sps:$4 sm:$0xff]  }
 0x51c   : > { %3034 = vmatpush1.bf16.msra.mxu0 %v3961_v62  ;;  %2994 = vmatprep.subr.bf16.mxu1 %v3962_v63  ;;  %v3991_v57 = vld [vmem:[#allocation20 + $0x170] ss:$8 sps:$4 sm:$0xff]   ;;  %v3994_v26 = vld [vmem:[#allocation20 + $0x184] ss:$8 sps:$4 sm:$0xff]   ;;  %v3996_v1 = vld [vmem:[#allocation20 + $0x80] ss:$8 sps:$4 sm:$0xff]  }
 0x51d   : > { %3035 = vmatprep.subr.bf16.mxu0 %v3964_v0  ;;  %v3997_v27 = vld [vmem:[#allocation20 + $0x180] ss:$8 sps:$4 sm:$0xff]   ;;  %v3998_v28 = vld [vmem:[#allocation20 + $0x94] ss:$8 sps:$4 sm:$0xff]   ;;  %v4002_v31 = vld [vmem:[#allocation20 + $0x90] ss:$8 sps:$4 sm:$0xff]  }
 0x51e   : > { %v4000_v29 = vld [vmem:[#allocation20 + $0x194] ss:$8 sps:$4 sm:$0xff]   ;;  %v4003_v33 = vld [vmem:[#allocation20 + $0x190] ss:$8 sps:$4 sm:$0xff]   ;;  %v4004_v34 = vld [vmem:[#allocation20 + $0xa4] ss:$8 sps:$4 sm:$0xff]  }
 0x51f   : > { %2995 = vmatpush1.bf16.msra.mxu1 %v3966_v3  ;;  %v4006_v35 = vld [vmem:[#allocation20 + $0x1a4] ss:$8 sps:$4 sm:$0xff]   ;;  %v4008_v36 = vld [vmem:[#allocation20 + $0xa0] ss:$8 sps:$4 sm:$0xff]   ;;  %v4010_v38 = vld [vmem:[#allocation20 + $0xb4] ss:$8 sps:$4 sm:$0xff]  }
 0x520   : > { %3036 = vmatpush1.bf16.msra.mxu0 %v3967_v4  ;;  %2996 = vmatprep.subr.bf16.mxu1 %v3968_v5  ;;  %v4009_v37 = vld [vmem:[#allocation20 + $0x1a0] ss:$8 sps:$4 sm:$0xff]   ;;  %v4012_v39 = vld [vmem:[#allocation20 + $0x1b4] ss:$8 sps:$4 sm:$0xff]   ;;  %v2464_v30 = vld [vmem:[#allocation7] sm:$0xf] }
 0x521   : > { %3037 = vmatprep.subr.bf16.mxu0 %v3970_v2  ;;  %v4777_v40 = vmul.f32 0.125, %v2464_v30  ;;  %v2466_v41 = vld [vmem:[#allocation8] sm:$0xf]  ;;  %v4014_v43 = vld [vmem:[#allocation20 + $0xb0] ss:$8 sps:$4 sm:$0xff]   ;;  %v2481_v48 = vshrl.u32 %v2480_v42, 7 }
 0x522   : > { %v4015_v44 = vld [vmem:[#allocation20 + $0x1b0] ss:$8 sps:$4 sm:$0xff]   ;;  %v2467_v45 = vmul.f32 0.125, %v2466_v41  ;;  %v4016_v32 = vld [vmem:[#allocation20 + $0xc4] ss:$8 sps:$4 sm:$0xff]  }
 0x523   : > { %2997 = vmatpush1.bf16.msra.mxu1 %v3972_v9  ;;  %v4018_v47 = vld [vmem:[#allocation20 + $0x1c4] ss:$8 sps:$4 sm:$0xff]   ;;  %v2468_v21 = vmul.f32 %v4777_v40, %v4777_v40  ;;  %v4020_v22 = vld [vmem:[#allocation20 + $0xc0] ss:$8 sps:$4 sm:$0xff]   ;;  %v4022_v8 = vld [vmem:[#allocation20 + $0xd4] ss:$8 sps:$4 sm:$0xff]  }
 0x524   : > { %3038 = vmatpush1.bf16.msra.mxu0 %v3973_v11  ;;  %2998 = vmatprep.subr.bf16.mxu1 %v3974_v12  ;;  %v4021_v49 = vld [vmem:[#allocation20 + $0x1c0] ss:$8 sps:$4 sm:$0xff]   ;;  %v4024_v50 = vld [vmem:[#allocation20 + $0x1d4] ss:$8 sps:$4 sm:$0xff]   ;;  %v4781_v52 = vsub.s32 1, %v2481_v48  ;;  %v2494_v55 = vsub.s32 3, %v2481_v48 }
 0x525   : > { %3039 = vmatprep.subr.bf16.mxu0 %v3976_v13  ;;  %v2469_v10 = vsub.f32 %v2467_v45, %v2468_v21  ;;  %v4026_v53 = vld [vmem:[#allocation20 + $0xd0] ss:$8 sps:$4 sm:$0xff]   ;;  %v4783_v14 = vsub.s32 0, %v2481_v48  ;;  %v4028_v56 = vld [vmem:[#allocation20 + $0xe4] ss:$8 sps:$4 sm:$0xff]   ;;  %v2490_v58 = vsub.s32 2, %v2481_v48 }
 0x526   : > { %v4027_v54 = vld [vmem:[#allocation20 + $0x1d0] ss:$8 sps:$4 sm:$0xff]   ;;  %v4030_v6 = vld [vmem:[#allocation20 + $0x1e4] ss:$8 sps:$4 sm:$0xff]   ;;  %v4032_v46 = vld [vmem:[#allocation20 + $0xe0] ss:$8 sps:$4 sm:$0xff]   ;;  %v2487_v62 = vrot.slane %v4777_v40, %v4781_v52  ;;  %v2495_v0 = vrot.slane %v4777_v40, %v2494_v55 }
 0x527   : > { %2999 = vmatpush1.bf16.msra.mxu1 %v3978_v15  ;;  %v2470_v51 = vadd.f32 1e-05, %v2469_v10  ;;  %v4033_v59 = vld [vmem:[#allocation20 + $0x1e0] ss:$8 sps:$4 sm:$0xff]   ;;  %v4034_v60 = vld [vmem:[#allocation20 + $0xf4] ss:$8 sps:$4 sm:$0xff]   ;;  %v2483_v3 = vrot.slane %v4777_v40, %v4783_v14  ;;  %v2491_v9 = vrot.slane %v4777_v40, %v2490_v58 }
 0x528   : > { %3040 = vmatpush1.bf16.msra.mxu0 %v3979_v17  ;;  %3000 = vmatprep.subr.bf16.mxu1 %v3980_v18  ;;  %v4036_v61 = vld [vmem:[#allocation20 + $0x1f4] ss:$8 sps:$4 sm:$0xff]   ;;  %v2478_v5 = vld [vmem:[#allocation3 + $0x18] sm:$0xff]  ;;  %v2477_v11 = vld [vmem:[#allocation3 + $0x10] sm:$0xff] }
 0x529   : > { %3041 = vmatprep.subr.bf16.mxu0 %v3982_v19  ;;  %4040 = vrsqrt.f32 %v2470_v51  ;;  %v2530_v63 = vld [vmem:[#allocation21 + $0x7] ss:$8 sm:$0xf]  ;;  %v4038_v12 = vld [vmem:[#allocation20 + $0xf0] ss:$8 sps:$4 sm:$0xff]   ;;  %v2503_v19 = vsub.f32 %v2478_v5, %v2495_v0 }
 0x52a   : > { %v2476_v4 = vld [vmem:[#allocation3 + $0x8] sm:$0xff]  ;;  %v2475_v2 = vld [vmem:[#allocation3] sm:$0xff]  ;;  %v2539_v13 = vrot.slane %v2530_v63, %v4781_v52 }
 0x52b   : > { %3001 = vmatpush1.bf16.msra.mxu1 %v3984_v20  ;;  %v4039_v15 = vld [vmem:[#allocation20 + $0x1f0] ss:$8 sps:$4 sm:$0xff]   ;;  %v2501_v17 = vsub.f32 %v2476_v4, %v2487_v62  ;;  %v2500_v20 = vsub.f32 %v2475_v2, %v2483_v3 }
 0x52c   : > { %3042 = vmatpush1.bf16.msra.mxu0 %v3985_v23  ;;  %3002 = vmatprep.subr.bf16.mxu1 %v3986_v7  ;;  %v2557_v18 = vld [vmem:[#allocation21 + $0x20] ss:$8 sm:$0xf]  ;;  %v2547_v7 = vrot.slane %v2530_v63, %v2494_v55 }
 0x52d   : > { %3043 = vmatprep.subr.bf16.mxu0 %v3988_v16  ;;  %v2535_v16 = vrot.slane %v2530_v63, %v4783_v14 }
 0x52f   : > { %3003 = vmatpush1.bf16.msra.mxu1 %v3990_v24  ;;  %v2502_v24 = vsub.f32 %v2477_v11, %v2491_v9 }
 0x530   : > { %3044 = vmatpush1.bf16.msra.mxu0 %v3991_v57  ;;  %3004 = vmatprep.subr.bf16.mxu1 %v3992_v25 }
 0x531   : > { %3045 = vmatprep.subr.bf16.mxu0 %v3994_v26 }
 0x533   : > { %3005 = vmatpush1.bf16.msra.mxu1 %v3996_v1  ;;  %v4041_v23 = vpop.eup %4040 }
 0x534   : > { %3046 = vmatpush1.bf16.msra.mxu0 %v3997_v27  ;;  %3006 = vmatprep.subr.bf16.mxu1 %v3998_v28  ;;  %v2512_v57 = vrot.slane %v4041_v23, %v4781_v52  ;;  %v2520_v25 = vrot.slane %v4041_v23, %v2494_v55  ;;  %v2508_v26 = vrot.slane %v4041_v23, %v4783_v14 }
 0x535   : > { %3047 = vmatprep.subr.bf16.mxu0 %v4000_v29  ;;  %v2516_v1 = vrot.slane %v4041_v23, %v2490_v58  ;;  %v2566_v27 = vrot.slane %v2557_v18, %v4781_v52  ;;  %v2574_v28 = vrot.slane %v2557_v18, %v2494_v55  ;;  %v2562_v29 = vrot.slane %v2557_v18, %v4783_v14 }
 0x537   : > { %3007 = vmatpush1.bf16.msra.mxu1 %v4002_v31  ;;  %v2543_v31 = vrot.slane %v2530_v63, %v2490_v58 }
 0x538   : > { %3048 = vmatpush1.bf16.msra.mxu0 %v4003_v33  ;;  %3008 = vmatprep.subr.bf16.mxu1 %v4004_v34  ;;  %v2526_v33 = vmul.f32 %v2512_v57, %v2501_v17  ;;  %v2528_v34 = vmul.f32 %v2520_v25, %v2503_v19 }
 0x539   : > { %3049 = vmatprep.subr.bf16.mxu0 %v4006_v35  ;;  %v2525_v35 = vmul.f32 %v2508_v26, %v2500_v20 }
 0x53b   : > { %3009 = vmatpush1.bf16.msra.mxu1 %v4008_v36  ;;  %v2527_v36 = vmul.f32 %v2516_v1, %v2502_v24  ;;  %v2552_v30 = vmul.f32 %v2535_v16, %v2525_v35 }
 0x53c   : > { %3050 = vmatpush1.bf16.msra.mxu0 %v4009_v37  ;;  %3010 = vmatprep.subr.bf16.mxu1 %v4010_v38  ;;  %v2570_v37 = vrot.slane %v2557_v18, %v2490_v58  ;;  %v2553_v38 = vmul.f32 %v2539_v13, %v2526_v33 }
 0x53d   : > { %3051 = vmatprep.subr.bf16.mxu0 %v4012_v39  ;;  %v2555_v39 = vmul.f32 %v2547_v7, %v2528_v34  ;;  %v2554_v40 = vmul.f32 %v2543_v31, %v2527_v36 }
 0x53e   : > { %v2580_v41 = vadd.f32 %v2566_v27, %v2553_v38 }
 0x53f   : > { %3011 = vmatpush1.bf16.msra.mxu1 %v4014_v43  ;;  %v2582_v42 = vadd.f32 %v2574_v28, %v2555_v39  ;;  %v2579_v43 = vadd.f32 %v2562_v29, %v2552_v30 }
 0x540   : > { %3052 = vmatpush1.bf16.msra.mxu0 %v4015_v44  ;;  %3012 = vmatprep.subr.bf16.mxu1 %v4016_v32  ;;  %v2581_v44 = vadd.f32 %v2570_v37, %v2554_v40  ;;  %v2584_v45 = vmax.f32 %v2580_v41, 0.0 }
 0x541   : > { %3053 = vmatprep.subr.bf16.mxu0 %v4018_v47  ;;  %v2586_v32 = vmax.f32 %v2582_v42, 0.0  ;;  %v2583_v47 = vmax.f32 %v2579_v43, 0.0 }
 0x542   : > { %v2585_v21 = vmax.f32 %v2581_v44, 0.0  ;;  %v2588_v10 = vpack.c.bf16 %v2584_v45, %v2584_v45 }
 0x543   : > { %3013 = vmatpush1.bf16.msra.mxu1 %v4020_v22  ;;  %v2590_v48 = vpack.c.bf16 %v2586_v32, %v2586_v32  ;;  %v2587_v22 = vpack.c.bf16 %v2583_v47, %v2583_v47 }
 0x544   : > { %3054 = vmatpush1.bf16.msra.mxu0 %v4021_v49  ;;  %3014 = vmatprep.subr.bf16.mxu1 %v4022_v8  ;;  %v2589_v49 = vpack.c.bf16 %v2585_v21, %v2585_v21  ;;  %v2656_v8 = vld [vmem:[#allocation21 + $0x21] ss:$8 sm:$0x3] }
 0x545   : > { %3055 = vmatprep.subr.bf16.mxu0 %v4024_v50  ;;  %3020 = vmatprep.mubr.bf16.mxu1 %v2588_v10  ;;  %v2661_v50 = vrot.slane %v2656_v8, %v4783_v14  ;;  %v2665_v51 = vrot.slane %v2656_v8, %v4781_v52 }
 0x546   : > { %3061 = vmatprep.mubr.bf16.mxu0 %v2590_v48 }
 0x547   : > { %3015 = vmatpush1.bf16.msra.mxu1 %v4026_v53 }
 0x548   : > { %3056 = vmatpush1.bf16.msra.mxu0 %v4027_v54  ;;  %3016 = vmatprep.subr.bf16.mxu1 %v4028_v56 }
 0x549   : > { %3057 = vmatprep.subr.bf16.mxu0 %v4030_v6 }
 0x54b   : > { %3017 = vmatpush1.bf16.msra.mxu1 %v4032_v46 }
 0x54c   : > { %3058 = vmatpush1.bf16.msra.mxu0 %v4033_v59  ;;  %3018 = vmatprep.subr.bf16.mxu1 %v4034_v60 }
 0x54d   : > { %3059 = vmatprep.subr.bf16.mxu0 %v4036_v61 }
 0x54f   : > { %3019 = vmatpush1.bf16.msra.mxu1 %v4038_v12 }
 0x550   : > { %3060 = vmatpush1.bf16.msra.mxu0 %v4039_v15 }
 0x552   : > { %3021 = vmatmul.mubr.bf16.vlgmr.msra.gmra.mrb[0].mxu1 %v2587_v22 }
 0x553   : > { %3062 = vmatmul.mubr.bf16.vlgmr.msra.gmra.mrb[0].mxu0 %v2589_v49 }
 0x625   : > { %v3022_v53 = vpop.f32.mrb[0].mxu1 }
 0x626   : > { %v3063_v54 = vpop.f32.mrb[0].mxu0  ;;  %v3023_v55 = vadd.f32 %v3022_v53, %v2661_v50  ;;  %v3024_v56 = vpop.f32.mrb[1].mxu1 }
 0x627   : > { %v3065_v6 = vpop.f32.mrb[1].mxu0  ;;  %v3025_v58 = vadd.f32 %v3024_v56, %v2665_v51  ;;  %v3026_v46 = vpop.f32.mrb[2].mxu1 }
 0x628   : > { %v3067_v59 = vpop.f32.mrb[2].mxu0  ;;  %v3064_v60 = vadd.f32 %v3063_v54, %v3023_v55  ;;  %v3027_v61 = vpop.f32.mrb[3].mxu1 }
 0x629   : > { %v3068_v62 = vpop.f32.mrb[3].mxu0  ;;  %v3066_v63 = vadd.f32 %v3065_v6, %v3025_v58 }
 0x62a   : > { %3070 = vst [vmem:[#allocation23] sm:$0xff] %v3064_v60 }
 0x62b   : > { %3071 = vst [vmem:[#allocation23 + $0x8] sm:$0xff] %v3066_v63 }
 0x62c PF: > { %s4864_s30 = sadd.s32 4294967295, %s4338_s11   ;;  %s4361_s27 = smov [#allocation23]  }
 0x62d   : > { %p4801_p3 = scmp.eq.s32.totalorder %s4864_s30, 2  ;;  %s3082_s26 = sshll.u32 %s4361_s27, 4  ;;  %s3083_s26 = int_to_ptr.vmem [resolvable:$true] %s3082_s26 }
 0x62e   : > { %s4266_s28 = scalar_lea.vmem %s3083_s26, 256  ;;  %p4273_p13 = scmp.lt.s32.totalorder %s3083_s26, %s3083_s26 }
 0x62f   : > { %p4267_p10 = scmp.ne.s32.totalorder %s3083_s26, %s4266_s28  ;;  %p4274_p0 = scmp.lt.s32.totalorder %s4266_s28, %s4266_s28 }
 0x631   : > { %p4268_p11 = pnand %p4267_p10, %p4801_p3  ;;  %p4275_p1 = por %p4274_p0, %p4273_p13 }
 0x633   : > { %p4269_p12 = pneg %p4268_p11 }
 0x635   : > { %p4276_p4 = pnand %p4275_p1, %p4269_p12 }
 0x637   : > { %4279 = shalt.err (!%p4276_p4)
}
 0x638   : > { %s4280_s22 = scalar_lea.hbm %s4845_s9, 256 }
 0x639   : > { %p4281_p6 = scmp.ne.s32.totalorder %s4845_s9, %s4280_s22  ;;  %p4286_p5 = scmp.lt.u32.totalorder %s4280_s22, %s4845_s9 }
 0x63b   : > { %p4282_p8 = pnand %p4281_p6, %p4801_p3 }
 0x63d   : > { %p4283_p9 = pneg %p4282_p8 }
 0x63f   : > { %p4288_p7 = pnand %p4286_p5, %p4283_p9 }
 0x641   : > { %4291 = shalt.err (!%p4288_p7)
}
 0x642   : > { %3576 = dma.vmem_to_hbm [thread:$0]  (%p4801_p3), %s3083_s26, 256, %s4845_s9, [#allocation11]  }
 0x643   : > { %4325 = dma.done.wait (%p4801_p3), [#allocation11], 256  }
 0x644   : > { %4327 = vsyncadd (%p4801_p3), [#allocation11], 4294967040 }
 0x645 PF: > { %s25_s11 = sadd.s32 1, %s4338_s11   ;;  %s4866_s30 = smov %s4334_s10 }
 0x646   : > { %p22_p2 = scmp.ge.s32.totalorder %s25_s11, 5   ;;  %s4867_s10 = smov %s4869_s23 }
 0x648   :  { %24 = sbr.rel (!%p22_p2) target bundleno = 9 (0x9), region = 146 }
 0x64f   :  { %3095 = vsyncpa [#allocation10], 1 }
 0x650   :  { %3097 = vsyncpa [#allocation10 + $0x1], 1 }
 0x651   :  { %3098 = vsyncpa [#allocation13], 1 }
 0x652   :  { %3099 = vsyncpa [#allocation16], 1 }
 0x653   :  { %3100 = vsyncpa [#allocation19], 1 }
 0x654   :  { %3101 = vsyncpa [#allocation22], 1 }
 0x655   :  { %3102 = vsyncpa [#allocation11], 1 }
 0x656   :  { %3104 = vsyncpa [#allocation11 + $0x1], 1 }

</bundles_post_ra>
